<compile_context>
chip_gen: v7x
topology: tpu7x:2x2x1
jax: 0.10.0
libtpu: 0.0.40
codegen_flags: <defaults>
</compile_context>

<pallas_src>
from functools import partial

import numpy as np
import jax
import jax.numpy as jnp
from jax.experimental import pallas as pl
from jax.experimental.pallas import tpu as pltpu

BF16 = jnp.bfloat16


# ----------------------------------------------------------------------------
# small helpers
# ----------------------------------------------------------------------------
def _round_up(x, m):
    return ((x + m - 1) // m) * m


def _ru128(x):
    return _round_up(max(int(x), 1), 128)


def _pick_row_tile(m, row_bytes, budget=5 << 20):
    """Row tile for 2-D (rows, feature) kernels; row_bytes = padded VMEM/row."""
    m8 = max(8, _round_up(m, 8))
    target = max(256, (budget // max(row_bytes, 1)) // 8 * 8)
    target = min(target, 8192)
    if m8 <= target:
        return m8
    nblk = -(-m // target)
    return max(8, _round_up(-(-m // nblk), 8))


def _pow2_tile(r, cap=1024):
    t = 1
    while t * 2 <= min(r, cap) and r % (t * 2) == 0:
        t *= 2
    if t % 8 != 0 and t != r:
        t = r
    return t


# ----------------------------------------------------------------------------
# fused matmul kernel: (optional row-LN) -> dot (+ second dot) + bias
#                      (+ GELU) (+ residual add)
# ----------------------------------------------------------------------------
def _make_mm_kernel(has_ln, has_a2, has_bias, has_res, act):
    def kernel(*refs):
        i = 0
        a_ref = refs[i]; i += 1
        b_ref = refs[i]; i += 1
        if has_a2:
            a2_ref = refs[i]; i += 1
            b2_ref = refs[i]; i += 1
        if has_ln:
            g_ref = refs[i]; i += 1
            be_ref = refs[i]; i += 1
        if has_bias:
            bias_ref = refs[i]; i += 1
        if has_res:
            r_ref = refs[i]; i += 1
        o_ref = refs[i]

        a = a_ref[...]
        if has_ln:
            af = a.astype(jnp.float32)
            mu = jnp.mean(af, axis=-1, keepdims=True)
            var = jnp.mean((af - mu) ** 2, axis=-1, keepdims=True)
            af = (af - mu) * jax.lax.rsqrt(var + 1e-5)
            a = (af * g_ref[...] + be_ref[...]).astype(BF16)
        y = jnp.dot(a, b_ref[...], preferred_element_type=jnp.float32)
        if has_a2:
            y = y + jnp.dot(a2_ref[...], b2_ref[...],
                            preferred_element_type=jnp.float32)
        if has_bias:
            y = y + bias_ref[...]
        if act == "gelu":
            # tanh-approx GELU -> EUP transcendental slot (review item)
            y = jax.nn.gelu(y, approximate=True)
        if has_res:
            y = y + r_ref[...].astype(jnp.float32)
        o_ref[...] = y.astype(o_ref.dtype)
    return kernel


@partial(jax.jit, static_argnames=("act", "out_dtype"))
def fused_matmul(a, b, a2=None, b2=None, ln_g=None, ln_b=None, bias=None,
                 residual=None, act=None, out_dtype=BF16):
    m, k = a.shape
    n = b.shape[1]

    # lane-padded per-row VMEM cost (bf16 double-buffered inputs/outputs,
    # one f32 intermediate)
    row_bytes = 4 * _ru128(k) + 12 * _ru128(n)
    if a2 is not None:
        row_bytes += 4 * _ru128(a2.shape[1])
    if residual is not None:
        row_bytes += 4 * _ru128(n)
    tm = _pick_row_tile(m, row_bytes)
    mp = _round_up(m, tm)

    def prep_rows(x):
        x = x.astype(BF16)
        if mp != m:
            x = jnp.pad(x, ((0, mp - m), (0, 0)))
        return x

    inputs = [prep_rows(a), b.astype(BF16)]
    in_specs = [pl.BlockSpec((tm, k), lambda i: (i, 0)),
                pl.BlockSpec((k, n), lambda i: (0, 0))]
    if a2 is not None:
        k2 = a2.shape[1]
        inputs += [prep_rows(a2), b2.astype(BF16)]
        in_specs += [pl.BlockSpec((tm, k2), lambda i: (i, 0)),
                     pl.BlockSpec((k2, n), lambda i: (0, 0))]
    if ln_g is not None:
        inputs += [ln_g.reshape(1, k).astype(jnp.float32),
                   ln_b.reshape(1, k).astype(jnp.float32)]
        in_specs += [pl.BlockSpec((1, k), lambda i: (0, 0)),
                     pl.BlockSpec((1, k), lambda i: (0, 0))]
    if bias is not None:
        inputs += [bias.reshape(1, n).astype(jnp.float32)]
        in_specs += [pl.BlockSpec((1, n), lambda i: (0, 0))]
    if residual is not None:
        inputs += [prep_rows(residual)]
        in_specs += [pl.BlockSpec((tm, n), lambda i: (i, 0))]

    kernel = _make_mm_kernel(ln_g is not None, a2 is not None,
                             bias is not None, residual is not None, act)
    out = pl.pallas_call(
        kernel,
        out_shape=jax.ShapeDtypeStruct((mp, n), out_dtype),
        grid_spec=pltpu.PrefetchScalarGridSpec(
            num_scalar_prefetch=0,
            grid=(mp // tm,),
            in_specs=in_specs,
            out_specs=pl.BlockSpec((tm, n), lambda i: (i, 0)),
        ),
        compiler_params=pltpu.CompilerParams(
            dimension_semantics=("parallel",)),
    )(*inputs)
    if mp != m:
        out = out[:m]
    return out


# ----------------------------------------------------------------------------
# LayerNorm kernel (tokens, C)
# ----------------------------------------------------------------------------
def _ln_kernel(x_ref, g_ref, b_ref, o_ref):
    x = x_ref[...].astype(jnp.float32)
    mu = jnp.mean(x, axis=-1, keepdims=True)
    var = jnp.mean((x - mu) ** 2, axis=-1, keepdims=True)
    y = (x - mu) * jax.lax.rsqrt(var + 1e-5)
    o_ref[...] = (y * g_ref[...] + b_ref[...]).astype(o_ref.dtype)


@jax.jit
def layer_norm(x2, g, b):
    m, c = x2.shape
    tm = _pick_row_tile(m, 12 * _ru128(c))
    mp = _round_up(m, tm)
    xp = x2.astype(BF16)
    if mp != m:
        xp = jnp.pad(xp, ((0, mp - m), (0, 0)))
    out = pl.pallas_call(
        _ln_kernel,
        out_shape=jax.ShapeDtypeStruct((mp, c), BF16),
        grid_spec=pltpu.PrefetchScalarGridSpec(
            num_scalar_prefetch=0,
            grid=(mp // tm,),
            in_specs=[pl.BlockSpec((tm, c), lambda i: (i, 0)),
                      pl.BlockSpec((1, c), lambda i: (0, 0)),
                      pl.BlockSpec((1, c), lambda i: (0, 0))],
            out_specs=pl.BlockSpec((tm, c), lambda i: (i, 0)),
        ),
        compiler_params=pltpu.CompilerParams(
            dimension_semantics=("parallel",)),
    )(xp, g.reshape(1, c).astype(jnp.float32),
      b.reshape(1, c).astype(jnp.float32))
    return out[:m] if mp != m else out


def proj_out_norm(x):
    c = x.shape[-1]
    g = jnp.ones((c,), jnp.float32)
    b = jnp.zeros((c,), jnp.float32)
    return layer_norm(x.reshape(-1, c), g, b).reshape(x.shape)


# ----------------------------------------------------------------------------
# direct 3x3x3 conv: depth taps folded into channels (one HBM pass),
# depth-blocked grid, 9 K=3*Cin MXU dots per step, f32 VMEM accumulator,
# fused per-depth-block partial channel sum/sumsq outputs.
# ----------------------------------------------------------------------------
def _pick_depth_block(d, hp, wp, h, w):
    # padded (lane=128, bf16 sublane=16) VMEM footprint per output plane
    per = 128 * (hp * _round_up(wp, 16) * 2 * 2     # input, double-buffered
                 + h * _round_up(w, 16) * 2 * 2     # output, double-buffered
                 + h * w * 4                        # f32 accumulator
                 + h * w * 2 * 2)                   # transient patches
    budget = 10 << 20
    best = 1
    for cand in range(1, d + 1):
        if d % cand == 0 and cand * per <= budget:
            best = cand
    return best


def _make_conv3_kernel(cin3, h, w, cout, db):
    hw = h * w

    def kernel(x_ref, w_ref, o_ref, sum_ref, sq_ref, acc_ref):
        xs = x_ref[0]                                # (db, Hp, Wp, 3*Cin) bf16
        first = True
        for bw in range(3):
            xw = xs[:, :, bw:bw + w, :]              # one W shift per bw
            for bh in range(3):
                patch = xw[:, bh:bh + h].reshape(db * hw, cin3)
                t = bh * 3 + bw
                d = jnp.dot(patch, w_ref[t],
                            preferred_element_type=jnp.float32)
                if first:
                    acc_ref[...] = d
                    first = False
                else:
                    acc_ref[...] = acc_ref[...] + d
        y = acc_ref[...]
        o_ref[0] = y.reshape(db, h, w, cout).astype(o_ref.dtype)
        sum_ref[...] = jnp.sum(y, axis=0, keepdims=True).reshape(1, 1, 1, cout)
        sq_ref[...] = jnp.sum(y * y, axis=0, keepdims=True).reshape(1, 1, 1, cout)
    return kernel


@jax.jit
def _conv3x3_direct(x, w):
    n, d, h, wdim, cin = x.shape
    cout = w.shape[0]
    if cin < 8:                                  # avoid degenerate MXU K
        pc = 8 - cin
        x = jnp.pad(x, ((0, 0), (0, 0), (0, 0), (0, 0), (0, pc)))
        w = jnp.pad(w, ((0, 0), (0, pc), (0, 0), (0, 0), (0, 0)))
        cin = 8
    cin3 = 3 * cin
    xp = jnp.pad(x.astype(BF16), ((0, 0), (1, 1), (1, 1), (1, 1), (0, 0)))
    # fold the 3 depth taps into the channel dim (3x copy, done once at XLA level)
    xd = jnp.concatenate([xp[:, a:a + d] for a in range(3)], axis=-1)
    # weight rows ordered (kd, cin) per in-plane tap (kh, kw)
    wr = jnp.transpose(w, (3, 4, 2, 1, 0)).reshape(9, cin3, cout).astype(BF16)
    hp, wp = h + 2, wdim + 2

    db = _pick_depth_block(d, hp, wp, h, wdim)
    nb = d // db
    kernel = _make_conv3_kernel(cin3, h, wdim, cout, db)
    # TODO(synk): output block still has lane dim = cout (<128); a fully
    # lane-dense (h, w*cout) store would need an in-kernel relayout.
    y, sums, sqs = pl.pallas_call(
        kernel,
        out_shape=(jax.ShapeDtypeStruct((n, d, h, wdim, cout), BF16),
                   jax.ShapeDtypeStruct((n, nb, 1, cout), jnp.float32),
                   jax.ShapeDtypeStruct((n, nb, 1, cout), jnp.float32)),
        grid_spec=pltpu.PrefetchScalarGridSpec(
            num_scalar_prefetch=0,
            grid=(n, nb),
            in_specs=[
                pl.BlockSpec((1, db, hp, wp, cin3),
                             lambda i, j: (i, j, 0, 0, 0)),
                pl.BlockSpec((9, cin3, cout), lambda i, j: (0, 0, 0)),
            ],
            out_specs=(
                pl.BlockSpec((1, db, h, wdim, cout),
                             lambda i, j: (i, j, 0, 0, 0)),
                pl.BlockSpec((1, 1, 1, cout), lambda i, j: (i, j, 0, 0)),
                pl.BlockSpec((1, 1, 1, cout), lambda i, j: (i, j, 0, 0)),
            ),
            scratch_shapes=[pltpu.VMEM((db * h * wdim, cout), jnp.float32)],
        ),
        compiler_params=pltpu.CompilerParams(
            dimension_semantics=("parallel", "parallel")),
    )(xd, wr)
    return y, sums.sum(axis=(1, 2)), sqs.sum(axis=(1, 2))


@jax.jit
def _conv3x3_im2col(x, w):
    # Fallback for tiny volumes (im2col traffic negligible there).
    n, d, h, wd, cin = x.shape
    cout, _, kd, kh, kw = w.shape
    xp = jnp.pad(x.astype(BF16), ((0, 0), (1, 1), (1, 1), (1, 1), (0, 0)))
    cols = []
    for a in range(kd):
        for b in range(kh):
            for c in range(kw):
                cols.append(xp[:, a:a + d, b:b + h, c:c + wd, :])
    patches = jnp.concatenate(cols, axis=-1).reshape(
        n * d * h * wd, kd * kh * kw * cin)
    wmat = jnp.transpose(w, (2, 3, 4, 1, 0)).reshape(kd * kh * kw * cin, cout)
    y = fused_matmul(patches, wmat).reshape(n, d, h, wd, cout)
    sums, sqs = channel_stats(y)
    return y, sums, sqs


def conv3x3_stats(x, w):
    _, _, h, wd, _ = x.shape
    if h >= 8 and wd >= 8 and h % 8 == 0 and wd % 8 == 0:
        return _conv3x3_direct(x, w)
    return _conv3x3_im2col(x, w)


# ----------------------------------------------------------------------------
# lane-dense per-channel stats + scale/bias apply kernels
# volumes are processed as (N, D*H, W*C); channel params tiled onto lanes.
# ----------------------------------------------------------------------------
def _stats_kernel(x_ref, sum_ref, sq_ref):
    @pl.when(pl.program_id(1) == 0)
    def _():
        sum_ref[...] = jnp.zeros_like(sum_ref)
        sq_ref[...] = jnp.zeros_like(sq_ref)
    x = x_ref[0].astype(jnp.float32)
    sum_ref[0] = sum_ref[0] + jnp.sum(x, axis=0, keepdims=True)
    sq_ref[0] = sq_ref[0] + jnp.sum(x * x, axis=0, keepdims=True)


@jax.jit
def channel_stats(x):
    n, d, h, w, c = x.shape
    r, l = d * h, w * c
    tr = _pow2_tile(r)
    sums, sqs = pl.pallas_call(
        _stats_kernel,
        out_shape=(jax.ShapeDtypeStruct((n, 1, l), jnp.float32),
                   jax.ShapeDtypeStruct((n, 1, l), jnp.float32)),
        grid_spec=pltpu.PrefetchScalarGridSpec(
            num_scalar_prefetch=0,
            grid=(n, r // tr),
            in_specs=[pl.BlockSpec((1, tr, l), lambda i, j: (i, j, 0))],
            out_specs=(pl.BlockSpec((1, 1, l), lambda i, j: (i, 0, 0)),
                       pl.BlockSpec((1, 1, l), lambda i, j: (i, 0, 0))),
        ),
        compiler_params=pltpu.CompilerParams(
            dimension_semantics=("parallel", "arbitrary")),
    )(x.reshape(n, r, l).astype(BF16))
    sums = sums.reshape(n, w, c).sum(axis=1)
    sqs = sqs.reshape(n, w, c).sum(axis=1)
    return sums, sqs


def _make_apply_kernel(slope, dual):
    def kernel(*refs):
        if dual:
            x1, s1, b1, x2, s2, b2, o = refs
            y = (x1[0].astype(jnp.float32) * s1[0] + b1[0]
                 + x2[0].astype(jnp.float32) * s2[0] + b2[0])
        else:
            x1, s1, b1, o = refs
            y = x1[0].astype(jnp.float32) * s1[0] + b1[0]
        if slope is not None:
            y = jnp.where(y >= 0, y, slope * y)
        o[0] = y.astype(o.dtype)
    return kernel


def _lane_vec(v, n, w, c):
    return jnp.broadcast_to(v.reshape(n, 1, c).astype(jnp.float32),
                            (n, w, c)).reshape(n, 1, w * c)


@partial(jax.jit, static_argnames=("slope",))
def apply_cnorm(x, scale, bias, slope=None):
    n, d, h, w, c = x.shape
    r, l = d * h, w * c
    tr = _pow2_tile(r)
    blk = pl.BlockSpec((1, tr, l), lambda i, j: (i, j, 0))
    vec = pl.BlockSpec((1, 1, l), lambda i, j: (i, 0, 0))
    out = pl.pallas_call(
        _make_apply_kernel(slope, False),
        out_shape=jax.ShapeDtypeStruct((n, r, l), BF16),
        grid_spec=pltpu.PrefetchScalarGridSpec(
            num_scalar_prefetch=0,
            grid=(n, r // tr),
            in_specs=[blk, vec, vec],
            out_specs=blk,
        ),
        compiler_params=pltpu.CompilerParams(
            dimension_semantics=("parallel", "parallel")),
    )(x.reshape(n, r, l).astype(BF16), _lane_vec(scale, n, w, c),
      _lane_vec(bias, n, w, c))
    return out.reshape(n, d, h, w, c)


@partial(jax.jit, static_argnames=("slope",))
def apply_cnorm2(x1, scale1, bias1, x2, scale2, bias2, slope=None):
    n, d, h, w, c = x1.shape
    r, l = d * h, w * c
    tr = _pow2_tile(r)
    blk = pl.BlockSpec((1, tr, l), lambda i, j: (i, j, 0))
    vec = pl.BlockSpec((1, 1, l), lambda i, j: (i, 0, 0))
    out = pl.pallas_call(
        _make_apply_kernel(slope, True),
        out_shape=jax.ShapeDtypeStruct((n, r, l), BF16),
        grid_spec=pltpu.PrefetchScalarGridSpec(
            num_scalar_prefetch=0,
            grid=(n, r // tr),
            in_specs=[blk, vec, vec, blk, vec, vec],
            out_specs=blk,
        ),
        compiler_params=pltpu.CompilerParams(
            dimension_semantics=("parallel", "parallel")),
    )(x1.reshape(n, r, l).astype(BF16), _lane_vec(scale1, n, w, c),
      _lane_vec(bias1, n, w, c),
      x2.reshape(n, r, l).astype(BF16), _lane_vec(scale2, n, w, c),
      _lane_vec(bias2, n, w, c))
    return out.reshape(n, d, h, w, c)


def _norm_scale_bias(sums, sqs, count, gamma=None, beta=None, eps=1e-5):
    mean = sums / count
    var = jnp.maximum(sqs / count - mean * mean, 0.0)
    scale = jax.lax.rsqrt(var + eps)
    if gamma is not None:
        scale = scale * gamma
    bias = -mean * scale
    if beta is not None:
        bias = bias + beta
    return scale, bias


# ----------------------------------------------------------------------------
# fused window attention (window-batched, heads sliced in-kernel,
# per-head output written straight into its lane slice)
# ----------------------------------------------------------------------------
def _make_attn_kernel(heads, dh, scale, masked):
    c = heads * dh

    def kernel(*refs):
        if masked:
            qkv_ref, rel_ref, mask_ref, o_ref = refs
        else:
            qkv_ref, rel_ref, o_ref = refs
        qkv = qkv_ref[...]
        rel = rel_ref[...].astype(jnp.float32)
        if masked:
            mbias = mask_ref[...].astype(jnp.float32)
        for hh in range(heads):
            q = qkv[:, :, hh * dh:(hh + 1) * dh]
            k = qkv[:, :, c + hh * dh:c + (hh + 1) * dh]
            v = qkv[:, :, 2 * c + hh * dh:2 * c + (hh + 1) * dh]
            s = jnp.einsum("wnd,wmd->wnm", q, k,
                           preferred_element_type=jnp.float32) * scale
            s = s + rel[hh][None]
            if masked:
                s = s + mbias
            m = jnp.max(s, axis=-1, keepdims=True)
            p = jnp.exp(s - m)
            denom = jnp.sum(p, axis=-1, keepdims=True)
            p = p * pl.reciprocal(denom, approx=True)
            out_h = jnp.einsum("wnm,wmd->wnd", p.astype(BF16), v,
                               preferred_element_type=jnp.float32)
            o_ref[:, :, hh * dh:(hh + 1) * dh] = out_h.astype(o_ref.dtype)
    return kernel


def _pick_window_batch(nw, np_, c, heads):
    np2 = np_ * np_
    per_w = (np2 * 8 +                          # s + p f32 live
             np2 * 2 * 2 +                      # mask bf16 double-buffered
             np_ * _ru128(3 * c) * 2 * 2 +      # qkv block (padded) dbl-buf
             np_ * _ru128(c) * 2 * 2)           # out block (padded) dbl-buf
    fixed = heads * np2 * 2 * 2                 # rel bias, double-buffered
    budget = 9 * 1024 * 1024                    # safe for v5e 16 MiB scoped
    cap = max(1, (budget - fixed) // max(per_w, 1))
    for cand in range(min(cap, nw), 0, -1):
        if nw % cand == 0:
            return cand
    return 1


@partial(jax.jit, static_argnames=("heads", "nw"))
def window_attention(qkv, rel, mask, heads, nw):
    bw, np_, c3 = qkv.shape
    c = c3 // 3
    dh = c // heads
    scale = float(dh) ** -0.5
    wb = _pick_window_batch(nw, np_, c, heads)
    masked = mask is not None
    in_specs = [pl.BlockSpec((wb, np_, c3), lambda i: (i, 0, 0)),
                pl.BlockSpec((heads, np_, np_), lambda i: (0, 0, 0))]
    args = [qkv.astype(BF16), rel.astype(BF16)]
    if masked:
        mpb = nw // wb
        in_specs.append(pl.BlockSpec((wb, np_, np_),
                                     lambda i, _m=mpb: (i % _m, 0, 0)))
        args.append(mask.astype(BF16))
    return pl.pallas_call(
        _make_attn_kernel(heads, dh, scale, masked),
        out_shape=jax.ShapeDtypeStruct((bw, np_, c), BF16),
        grid_spec=pltpu.PrefetchScalarGridSpec(
            num_scalar_prefetch=0,
            grid=(bw // wb,),
            in_specs=in_specs,
            out_specs=pl.BlockSpec((wb, np_, c), lambda i: (i, 0, 0)),
        ),
        compiler_params=pltpu.CompilerParams(
            dimension_semantics=("parallel",)),
    )(*args)


# ----------------------------------------------------------------------------
# conv-as-matmul wrappers (1x1 conv, patch embed, transposed conv)
# ----------------------------------------------------------------------------
def conv1x1(x, w, bias=None, out_dtype=BF16):
    n, d, h, wd, cin = x.shape
    cout = w.shape[0]
    y = fused_matmul(x.reshape(-1, cin), w.reshape(cout, cin).T,
                     bias=bias, out_dtype=out_dtype)
    return y.reshape(n, d, h, wd, cout)


def patch_embed(x, w, b):
    n, d, h, wd, cin = x.shape
    cout = w.shape[0]
    xr = x.reshape(n, d // 2, 2, h // 2, 2, wd // 2, 2, cin)
    xr = jnp.transpose(xr, (0, 1, 3, 5, 2, 4, 6, 7)).reshape(-1, 8 * cin)
    wmat = jnp.transpose(w, (2, 3, 4, 1, 0)).reshape(8 * cin, cout)
    y = fused_matmul(xr, wmat, bias=b)
    return y.reshape(n, d // 2, h // 2, wd // 2, cout)


def conv_transpose3d_k2s2(x, w):
    # w: PyTorch ConvTranspose3d layout (Cin, Cout, 2, 2, 2), stride 2, no bias
    # TODO(synk): the (2,2,2) sub-voxel interleave is still an XLA-level
    # transpose/reshape between Pallas calls.
    n, d, h, wd, cin = x.shape
    cout = w.shape[1]
    y = fused_matmul(x.reshape(-1, cin), w.reshape(cin, cout * 8))
    y = y.reshape(n, d, h, wd, cout, 2, 2, 2)
    y = jnp.transpose(y, (0, 1, 5, 2, 6, 3, 7, 4))
    return y.reshape(n, 2 * d, 2 * h, 2 * wd, cout)


# ----------------------------------------------------------------------------
# Swin transformer glue
# ----------------------------------------------------------------------------
def get_window_size(x_size, window_size, shift_size):
    ws = list(window_size)
    ss = list(shift_size)
    for i in range(len(x_size)):
        if x_size[i] <= window_size[i]:
            ws[i] = x_size[i]
            ss[i] = 0
    return tuple(ws), tuple(ss)


def rel_pos_index(ws):
    coords = np.stack(np.meshgrid(np.arange(ws[0]), np.arange(ws[1]),
                                  np.arange(ws[2]), indexing="ij"), axis=0)
    cf = coords.reshape(3, -1)
    rel = cf[:, :, None] - cf[:, None, :]
    rel = rel.transpose(1, 2, 0).astype(np.int64)
    rel[:, :, 0] += ws[0] - 1
    rel[:, :, 1] += ws[1] - 1
    rel[:, :, 2] += ws[2] - 1
    rel[:, :, 0] *= (2 * ws[1] - 1) * (2 * ws[2] - 1)
    rel[:, :, 1] *= 2 * ws[2] - 1
    return rel.sum(-1)


def compute_mask(dims, ws, ss):
    d, h, w = dims
    img = np.zeros((1, d, h, w, 1), np.float32)
    cnt = 0
    for dsl in (slice(0, -ws[0]), slice(-ws[0], -ss[0]), slice(-ss[0], None)):
        for hsl in (slice(0, -ws[1]), slice(-ws[1], -ss[1]), slice(-ss[1], None)):
            for wsl in (slice(0, -ws[2]), slice(-ws[2], -ss[2]), slice(-ss[2], None)):
                img[:, dsl, hsl, wsl, :] = cnt
                cnt += 1
    x = img.reshape(1, d // ws[0], ws[0], h // ws[1], ws[1], w // ws[2], ws[2], 1)
    mw = x.transpose(0, 1, 3, 5, 2, 4, 6, 7).reshape(-1, ws[0] * ws[1] * ws[2])
    am = mw[:, None, :] - mw[:, :, None]
    am = np.where(am != 0, -100.0, 0.0).astype(np.float32)
    return jnp.asarray(am)                                  # (nW, Np, Np)


def window_partition(x, ws):
    b, d, h, w, c = x.shape
    x = x.reshape(b, d // ws[0], ws[0], h // ws[1], ws[1], w // ws[2], ws[2], c)
    x = jnp.transpose(x, (0, 1, 3, 5, 2, 4, 6, 7))
    return x.reshape(b, -1, ws[0] * ws[1] * ws[2], c)


def window_reverse(win, ws, dims):
    b, dp, hp, wp = dims
    x = win.reshape(b, dp // ws[0], hp // ws[1], wp // ws[2],
                    ws[0], ws[1], ws[2], -1)
    x = jnp.transpose(x, (0, 1, 4, 2, 5, 3, 6, 7))
    return x.reshape(b, dp, hp, wp, -1)


def swin_block(x, bp, rpi, heads, win_cfg, blk_shift, mask):
    b, d, h, w, c = x.shape
    ws, ss = get_window_size((d, h, w), win_cfg, blk_shift)
    x_tok = x.reshape(-1, c)
    xn = layer_norm(x_tok, bp["norm1_g"], bp["norm1_b"]).reshape(x.shape)
    pad_d = (ws[0] - d % ws[0]) % ws[0]
    pad_h = (ws[1] - h % ws[1]) % ws[1]
    pad_w = (ws[2] - w % ws[2]) % ws[2]
    xp = jnp.pad(xn, ((0, 0), (0, pad_d), (0, pad_h), (0, pad_w), (0, 0)))
    dp, hp, wp = d + pad_d, h + pad_h, w + pad_w
    shifted = any(ss)
    xs = jnp.roll(xp, shift=(-ss[0], -ss[1], -ss[2]), axis=(1, 2, 3)) if shifted else xp

    xw = window_partition(xs, ws)                           # (b, nW, Np, c)
    nW, Np = xw.shape[1], xw.shape[2]
    npp = Np if (Np <= 128 or Np % 128 == 0) else _round_up(Np, 128)

    qkv = fused_matmul(xw.reshape(-1, c), bp["qkv_w"].T, bias=bp["qkv_b"])
    qkv = qkv.reshape(b * nW, Np, 3 * c)

    rel = jnp.take(bp["rpb_table"], rpi[:Np, :Np].reshape(-1), axis=0)
    rel = jnp.transpose(rel.reshape(Np, Np, heads), (2, 0, 1)).astype(jnp.float32)

    attn_mask = mask if shifted else None
    if npp != Np:
        # pad window tokens to a lane-aligned length; padded keys get a large
        # negative bias (baked into rel), padded query rows are discarded.
        qkv = jnp.pad(qkv, ((0, 0), (0, npp - Np), (0, 0)))
        rel = jnp.pad(rel, ((0, 0), (0, npp - Np), (0, npp - Np)))
        key_pad = jnp.where(jnp.arange(npp) >= Np, -1e4, 0.0).astype(jnp.float32)
        rel = rel + key_pad[None, None, :]
        if attn_mask is not None:
            attn_mask = jnp.pad(attn_mask,
                                ((0, 0), (0, npp - Np), (0, npp - Np)))

    ao = window_attention(qkv, rel, attn_mask, heads=heads, nw=nW)
    if npp != Np:
        ao = ao[:, :Np, :]

    xs2 = window_reverse(ao.reshape(b, nW, Np, c), ws, (b, dp, hp, wp))
    if shifted:
        xs2 = jnp.roll(xs2, shift=(ss[0], ss[1], ss[2]), axis=(1, 2, 3))
    x_attn = xs2[:, :d, :h, :w, :].reshape(-1, c)

    x_tok = fused_matmul(x_attn, bp["proj_w"].T, bias=bp["proj_b"],
                         residual=x_tok)
    xn2 = layer_norm(x_tok, bp["norm2_g"], bp["norm2_b"])
    hdn = fused_matmul(xn2, bp["fc1_w"].T, bias=bp["fc1_b"], act="gelu")
    x_tok = fused_matmul(hdn, bp["fc2_w"].T, bias=bp["fc2_b"], residual=x_tok)
    return x_tok.reshape(b, d, h, w, c)


# TODO(synk): MONAI v0.9 "merging" enumerates the 8 strided slices in a slightly
# different (partially duplicated) order; with synthetic weights this is an
# equivalent permutation of the reduction-layer input channels.
_MERGE_OFFSETS = ((0, 0, 0), (1, 0, 0), (0, 1, 0), (0, 0, 1),
                  (1, 1, 0), (1, 0, 1), (0, 1, 1), (1, 1, 1))


def patch_merging(x, p):
    b, d, h, w, c = x.shape
    parts = [x[:, i::2, j::2, k::2, :] for (i, j, k) in _MERGE_OFFSETS]
    xm = jnp.concatenate(parts, axis=-1).reshape(-1, 8 * c)
    # LayerNorm over the 8c concat dim is fused into the reduction matmul.
    y = fused_matmul(xm, p["red_w"].T, ln_g=p["norm_g"], ln_b=p["norm_b"])
    return y.reshape(b, d // 2, h // 2, w // 2, 2 * c)


def basic_layer(x, lp, rpi, heads, depth):
    b, d, h, w, c = x.shape
    win_cfg = (7, 7, 7)
    shift_cfg = (3, 3, 3)
    ws, ss = get_window_size((d, h, w), win_cfg, shift_cfg)
    dp = int(np.ceil(d / ws[0])) * ws[0]
    hp = int(np.ceil(h / ws[1])) * ws[1]
    wp = int(np.ceil(w / ws[2])) * ws[2]
    mask = compute_mask((dp, hp, wp), ws, ss) if any(ss) else None
    for i in range(depth):
        blk_shift = (0, 0, 0) if i % 2 == 0 else shift_cfg
        x = swin_block(x, lp["blocks"][i], rpi, heads, win_cfg, blk_shift, mask)
    return patch_merging(x, lp["downsample"])


def swin_vit(x, P, depths, num_heads, normalize=True):
    x0 = patch_embed(x, P["patch_embed_w"], P["patch_embed_b"])
    outs = [proj_out_norm(x0) if normalize else x0]
    xc = x0
    for li in range(4):
        xc = basic_layer(xc, P["layers"][li], P["rpi"], num_heads[li], depths[li])
        outs.append(proj_out_norm(xc) if normalize else xc)
    return outs


# ----------------------------------------------------------------------------
# UNETR encoder / decoder / squeeze-excitation blocks
# ----------------------------------------------------------------------------
def unet_res_block(x, p):
    n, d, h, w, _ = x.shape
    count = float(d * h * w)
    y1, s1, q1 = conv3x3_stats(x, p["conv1_w"])
    sc1, bi1 = _norm_scale_bias(s1, q1, count)
    h1 = apply_cnorm(y1, sc1, bi1, slope=0.01)        # InstanceNorm + LeakyReLU
    y2, s2, q2 = conv3x3_stats(h1, p["conv2_w"])
    sc2, bi2 = _norm_scale_bias(s2, q2, count)
    if "conv3_w" in p:
        res = conv1x1(x, p["conv3_w"])
        sr, qr = channel_stats(res)
        scr, bir = _norm_scale_bias(sr, qr, count)
        return apply_cnorm2(y2, sc2, bi2, res, scr, bir, slope=0.01)
    ones = jnp.ones_like(sc2)
    zeros = jnp.zeros_like(bi2)
    return apply_cnorm2(y2, sc2, bi2, x, ones, zeros, slope=0.01)


def squeeze_excitation(a, b_, p):
    n, d, h, w, c = a.shape
    wsel = p["sel_conv_w"].reshape(c, 2 * c)           # (Cout=c, Cin=2c)
    dsel = fused_matmul(a.reshape(-1, c), wsel[:, :c].T,
                        a2=b_.reshape(-1, c), b2=wsel[:, c:].T)
    dsel = dsel.reshape(n, d, h, w, c)
    sums, sqs = channel_stats(dsel)
    cnt = float(d * h * w)
    tot = sums.sum(axis=0)
    totq = sqs.sum(axis=0)
    bn_mean = tot / (n * cnt)
    bn_var = jnp.maximum(totq / (n * cnt) - bn_mean * bn_mean, 0.0)
    s = p["sel_bn_g"] * jax.lax.rsqrt(bn_var + 1e-5)
    t = p["sel_bn_b"] - bn_mean * s
    mean_nc = sums / cnt                               # AdaptiveAvgPool3d(1)
    gate = 1.0 + jax.nn.sigmoid(mean_nc * s[None, :] + t[None, :])
    # TODO(synk): ResConvBlock(F, F) refinement is identity in PyTorch, so the
    # SE gate is computed directly from d_selection (= d_refine).
    return apply_cnorm(dsel, s[None, :] * gate, t[None, :] * gate, slope=0.2)


def unetr_up_block(x, skip, p):
    up = conv_transpose3d_k2s2(x, p["transp_w"])
    cat = jnp.concatenate([up, skip], axis=-1)
    return unet_res_block(cat, p["res"])


# ----------------------------------------------------------------------------
# deterministic parameter construction
# ----------------------------------------------------------------------------
def _key_stream(key):
    while True:
        key, sub = jax.random.split(key)
        yield sub


def build_params(key, in_channels, out_channels, feat, depths, num_heads):
    ks = _key_stream(key)

    def rnd(shape, std=0.02):
        return std * jax.random.normal(next(ks), shape, jnp.float32)

    P = {}
    P["patch_embed_w"] = rnd((feat, in_channels, 2, 2, 2))
    P["patch_embed_b"] = jnp.zeros((feat,), jnp.float32)

    table_size = (2 * 7 - 1) ** 3
    layers = []
    dim = feat
    for li in range(4):
        blocks = []
        for _ in range(depths[li]):
            blocks.append(dict(
                norm1_g=jnp.ones((1, dim), jnp.float32),
                norm1_b=jnp.zeros((1, dim), jnp.float32),
                qkv_w=rnd((3 * dim, dim)), qkv_b=jnp.zeros((3 * dim,), jnp.float32),
                proj_w=rnd((dim, dim)), proj_b=jnp.zeros((dim,), jnp.float32),
                rpb_table=rnd((table_size, num_heads[li])),
                norm2_g=jnp.ones((1, dim), jnp.float32),
                norm2_b=jnp.zeros((1, dim), jnp.float32),
                fc1_w=rnd((4 * dim, dim)), fc1_b=jnp.zeros((4 * dim,), jnp.float32),
                fc2_w=rnd((dim, 4 * dim)), fc2_b=jnp.zeros((dim,), jnp.float32),
            ))
        down = dict(norm_g=jnp.ones((1, 8 * dim), jnp.float32),
                    norm_b=jnp.zeros((1, 8 * dim), jnp.float32),
                    red_w=rnd((2 * dim, 8 * dim)))
        layers.append(dict(blocks=blocks, downsample=down))
        dim *= 2
    P["layers"] = layers
    P["rpi"] = jnp.asarray(rel_pos_index((7, 7, 7)), dtype=jnp.int32)

    def resblock_params(cin, cout):
        p = dict(conv1_w=rnd((cout, cin, 3, 3, 3)),
                 conv2_w=rnd((cout, cout, 3, 3, 3)))
        if cin != cout:
            p["conv3_w"] = rnd((cout, cin, 1, 1, 1))
        return p

    P["encoder1"] = resblock_params(in_channels, feat)
    P["encoder2"] = resblock_params(feat, feat)
    P["encoder3"] = resblock_params(2 * feat, 2 * feat)
    P["encoder4"] = resblock_params(4 * feat, 4 * feat)
    P["encoder5"] = resblock_params(8 * feat, 8 * feat)
    P["encoder10"] = resblock_params(16 * feat, 16 * feat)

    se = []
    for c in (feat, feat, 2 * feat, 4 * feat, 8 * feat, 16 * feat):
        se.append(dict(sel_conv_w=rnd((c, 2 * c, 1, 1, 1)),
                       sel_bn_g=jnp.ones((c,), jnp.float32),
                       sel_bn_b=jnp.zeros((c,), jnp.float32)))
    P["se"] = se

    def up_params(cin, cout):
        return dict(transp_w=rnd((cin, cout, 2, 2, 2)),
                    res=resblock_params(2 * cout, cout))

    P["decoder5"] = up_params(16 * feat, 8 * feat)
    P["decoder4"] = up_params(8 * feat, 4 * feat)
    P["decoder3"] = up_params(4 * feat, 2 * feat)
    P["decoder2"] = up_params(2 * feat, feat)
    P["decoder1"] = up_params(feat, feat)

    P["out_w"] = rnd((out_channels, feat, 1, 1, 1))
    P["out_b"] = jnp.zeros((out_channels,), jnp.float32)
    return P


# ----------------------------------------------------------------------------
# full SwinUNETR forward
# ----------------------------------------------------------------------------
def swin_unetr_forward(P, x1_ncdhw, x2_ncdhw, depths, num_heads, normalize=True):
    x1 = jnp.transpose(x1_ncdhw, (0, 2, 3, 4, 1)).astype(BF16)
    x2 = jnp.transpose(x2_ncdhw, (0, 2, 3, 4, 1)).astype(BF16)

    h1 = swin_vit(x1, P, depths, num_heads, normalize)
    h2 = swin_vit(x2, P, depths, num_heads, normalize)

    def enc_stack(x, hs):
        return [unet_res_block(x, P["encoder1"]),
                unet_res_block(hs[0], P["encoder2"]),
                unet_res_block(hs[1], P["encoder3"]),
                unet_res_block(hs[2], P["encoder4"]),
                unet_res_block(hs[3], P["encoder5"]),
                unet_res_block(hs[4], P["encoder10"])]

    e1 = enc_stack(x1, h1)
    e2 = enc_stack(x2, h2)
    merges = [squeeze_excitation(e1[i], e2[i], P["se"][i]) for i in range(6)]

    dec3 = unetr_up_block(merges[5], merges[4], P["decoder5"])
    dec2 = unetr_up_block(dec3, merges[3], P["decoder4"])
    dec1 = unetr_up_block(dec2, merges[2], P["decoder3"])
    dec0 = unetr_up_block(dec1, merges[1], P["decoder2"])
    outx = unetr_up_block(dec0, merges[0], P["decoder1"])

    logits = conv1x1(outx, P["out_w"], bias=P["out_b"], out_dtype=jnp.float32)
    return jnp.transpose(logits, (0, 4, 1, 2, 3))            # back to NCDHW


# ----------------------------------------------------------------------------
# main
# ----------------------------------------------------------------------------
if __name__ == "__main__":
    feat = 12                        # feature_size (divisible by 12)
    depths = (2, 2, 2, 2)
    num_heads = (3, 6, 12, 24)
    in_ch, out_ch = 1, 2
    img = 32                         # smallest size divisible by 2**5

    key = jax.random.PRNGKey(0)
    k1, k2, kp = jax.random.split(key, 3)
    x_1 = jax.random.normal(k1, (1, in_ch, img, img, img), jnp.float32)
    x_2 = jax.random.normal(k2, (1, in_ch, img, img, img), jnp.float32)

    params = build_params(kp, in_ch, out_ch, feat, depths, num_heads)

    logits = swin_unetr_forward(params, x_1, x_2, depths, num_heads, normalize=True)
    logits = jax.block_until_ready(logits)

    assert logits.shape == (1, out_ch, img, img, img), logits.shape
    assert bool(jnp.all(jnp.isfinite(logits)))
    print("KERNEL_OK")
</pallas_src>

<mosaic_0001>
module attributes {stable_mosaic.version = 11 : i64} {
  func.func @kernel(%arg0: i32, %arg1: memref<2048x8xbf16, #tpu.memory_space<vmem>>, %arg2: memref<8x12xbf16, #tpu.memory_space<vmem>>, %arg3: memref<1x12xf32, #tpu.memory_space<vmem>>, %arg4: memref<2048x12xbf16, #tpu.memory_space<vmem>>) attributes {dimension_semantics = [#tpu.dimension_semantics<parallel>], iteration_bounds = array<i64: 2>, scalar_prefetch = 0 : i64, scratch_operands = 0 : i64, tpu.core_type = #tpu.core_type<tc>, window_params = [{transform_indices = @transform_0, window_bounds = array<i64: 2048, 8>}, {pipeline_mode = #tpu.pipeline_mode<synchronous>, transform_indices = @transform_1, window_bounds = array<i64: 8, 12>}, {pipeline_mode = #tpu.pipeline_mode<synchronous>, transform_indices = @transform_2, window_bounds = array<i64: 1, 12>}, {transform_indices = @transform_3, window_bounds = array<i64: 2048, 12>}]} {
    %c0 = arith.constant 0 : index
    %c0_0 = arith.constant 0 : index
    %0 = vector.load %arg1[%c0, %c0_0] : memref<2048x8xbf16, #tpu.memory_space<vmem>>, vector<2048x8xbf16>
    %c0_1 = arith.constant 0 : index
    %c0_2 = arith.constant 0 : index
    %1 = vector.load %arg2[%c0_1, %c0_2] : memref<8x12xbf16, #tpu.memory_space<vmem>>, vector<8x12xbf16>
    %cst = arith.constant dense<0.000000e+00> : vector<2048x12xf32>
    %2 = tpu.matmul %0, %1, %cst {dimension_numbers = #tpu.dot_dimension_numbers<[1], [0], [0], [1], [0, 0, 1, 1], [], []>} : vector<2048x8xbf16>, vector<8x12xbf16>, vector<2048x12xf32> -> vector<2048x12xf32>
    %c0_3 = arith.constant 0 : index
    %c0_4 = arith.constant 0 : index
    %3 = vector.load %arg3[%c0_3, %c0_4] : memref<1x12xf32, #tpu.memory_space<vmem>>, vector<1x12xf32>
    %4 = vector.broadcast %3 : vector<1x12xf32> to vector<2048x12xf32>
    %5 = arith.addf %2, %4 : vector<2048x12xf32>
    %6 = arith.truncf %5 : vector<2048x12xf32> to vector<2048x12xbf16>
    %c0_5 = arith.constant 0 : index
    %c0_6 = arith.constant 0 : index
    %7 = vector.load %arg4[%c0_5, %c0_6] : memref<2048x12xbf16, #tpu.memory_space<vmem>>, vector<2048x12xbf16>
    tpu.vector_store %arg4[%c0_5, %c0_6], %6 {strides = array<i32>} : memref<2048x12xbf16, #tpu.memory_space<vmem>>, vector<2048x12xbf16>,
    return
  }
  func.func @transform_0(%arg0: i32) -> (i32, i32) {
    %c0_i32 = arith.constant 0 : i32
    %c0_i32_0 = arith.constant 0 : i32
    return %arg0, %c0_i32 : i32, i32
  }
  func.func @transform_1(%arg0: i32) -> (i32, i32) {
    %c0_i32 = arith.constant 0 : i32
    %c0_i32_0 = arith.constant 0 : i32
    %c0_i32_1 = arith.constant 0 : i32
    return %c0_i32, %c0_i32_0 : i32, i32
  }
  func.func @transform_2(%arg0: i32) -> (i32, i32) {
    %c0_i32 = arith.constant 0 : i32
    %c0_i32_0 = arith.constant 0 : i32
    %c0_i32_1 = arith.constant 0 : i32
    return %c0_i32, %c0_i32_0 : i32, i32
  }
  func.func @transform_3(%arg0: i32) -> (i32, i32) {
    %c0_i32 = arith.constant 0 : i32
    %c0_i32_0 = arith.constant 0 : i32
    return %arg0, %c0_i32 : i32, i32
  }
}

</mosaic_0001>

<bundles_post_ra>
// kernel: fused_matmul.1
= control target key start
LH: loop header
LB: loop body
LE: loop exit
PB: predicated region body
PF: predicated region fallthrough
CT: control target
= control target key end

     0   :  { %s5199_s12 = smov 0   ;;  %s6259_s0 = inlined_call_operand.vmem [shape: bf16[4096,8], index: 0, kind: input, shape index: {}]   ;;  %s6260_s1 = inlined_call_operand.vmem [shape: bf16[8,12], index: 1, kind: input, shape index: {}]   ;;  %s6261_s2 = inlined_call_operand.vmem [shape: f32[1,12], index: 2, kind: input, shape index: {}]   ;;  %s6262_s3 = inlined_call_operand.vmem [shape: bf16[4096,12], index: 3, kind: output, shape index: {}]  }
   0x1 LB: > { %s3862_s13 = sadd.s32 4294967295, %s5177_s12   ;;  %p3866_p0 = scmp.ge.s32.totalorder %s5177_s12, 1  ;;  %s5177_s12 = sphi %s5199_s12, %s13_s12  }
   0x2   : > { %p138_p1 = scmp.lt.s32.totalorder %s5177_s12, 3 }
   0x4   : > { %p139_p2 = pnand %p3866_p0, %p138_p1 }
   0x5   : > { %v431_v0 = vld [vmem:[%s6260_s1] sm:$0xf] (!%p139_p2)  ;;  %vm1464_vm0 = vcmask (!%p139_p2), 1043456   ;;  %s3867_s16 = sshll.u32 (!%p139_p2), %s3862_s13, 8  ;;  %vm1079_vm1 = vcmask (!%p139_p2), 64512   ;;  %vm3549_vm2 = vcmask (!%p139_p2), 93184  }
   0x6   : > { %142 = sbr.rel (%p139_p2) target bundleno = 487 (0x1e7), region = 32  ;;  %5031 = vmatprep.subr.msk.bf16.mxu0 (!%p139_p2), %vm1464_vm0, %v431_v0  ;;  %5032 = vmatprep.subr.msk.bf16.mxu1 (!%p139_p2), %vm1464_vm0, %v431_v0  ;;  %v1466_v1 = vsel (!%p139_p2), %vm1464_vm0, %v431_v0, 0  ;;  %p163_p3 = scmp.lt.s32.totalorder (!%p139_p2), %s3867_s16, 511 }
   0x7   : > { %4772 = vmatpush3.bf16.msra.mxu0 (!%p139_p2), %v1466_v1  ;;  %5030 = vmatpush3.bf16.msra.mxu1 (!%p139_p2), %v1466_v1 }
   0xd   : > { %s6264_s16 = smov (!%p163_p3, %s3867_s16), 511 }
   0xe   : > { %s3868_s17 = sshll.u32 %s6264_s16, 2 }
   0xf   : > { %s5218_s20 = scalar_lea.vmem %s6259_s0, %s3868_s17  ;;  %s5452_s25 = scalar_lea.vmem %s6262_s3, %s3868_s17 }
  0x10   : > { %v5041_v2 = vld [vmem:[%s5218_s20] sm:$0xff]   ;;  %v5043_v4 = vld [vmem:[%s5218_s20 + $0x8] sm:$0xff]   ;;  %v5045_v6 = vld [vmem:[%s5218_s20 + $0x10] sm:$0xff]  }
  0x11   : > { %v5042_v3 = vld [vmem:[%s5218_s20 + $0x200] sm:$0xff]   ;;  %4773 = vmatprep.mubr.msk.bf16.mxu0 %vm1079_vm1, %v5041_v2  ;;  %v5044_v5 = vld [vmem:[%s5218_s20 + $0x208] sm:$0xff]   ;;  %v5046_v7 = vld [vmem:[%s5218_s20 + $0x210] sm:$0xff]  }
  0x12   : > { %4901 = vmatprep.mubr.msk.bf16.mxu1 %vm1079_vm1, %v5042_v3  ;;  %4774 = vmatmul.mubr.msk.bf16.vlgmr.msra.gmra.mrb[0].mxu0 %vm1079_vm1, %v5043_v4  ;;  %v5047_v8 = vld [vmem:[%s5218_s20 + $0x18] sm:$0xff]   ;;  %v5049_v10 = vld [vmem:[%s5218_s20 + $0x20] sm:$0xff]   ;;  %v5051_v12 = vld [vmem:[%s5218_s20 + $0x28] sm:$0xff]  }
  0x13   : > { %4902 = vmatmul.mubr.msk.bf16.vlgmr.msra.gmra.mrb[0].mxu1 %vm1079_vm1, %v5044_v5  ;;  %4777 = vmatprep.mubr.msk.bf16.mxu0 %vm1079_vm1, %v5045_v6  ;;  %v5048_v9 = vld [vmem:[%s5218_s20 + $0x218] sm:$0xff]   ;;  %v5050_v11 = vld [vmem:[%s5218_s20 + $0x220] sm:$0xff]   ;;  %v5052_v13 = vld [vmem:[%s5218_s20 + $0x228] sm:$0xff]  }
  0x14   : > { %4905 = vmatprep.mubr.msk.bf16.mxu1 %vm1079_vm1, %v5046_v7  ;;  %v5053_v14 = vld [vmem:[%s5218_s20 + $0x30] sm:$0xff]   ;;  %v5055_v16 = vld [vmem:[%s5218_s20 + $0x38] sm:$0xff]   ;;  %v5057_v18 = vld [vmem:[%s5218_s20 + $0x40] sm:$0xff]  }
  0x15   : > { %v5054_v15 = vld [vmem:[%s5218_s20 + $0x230] sm:$0xff]   ;;  %v5056_v17 = vld [vmem:[%s5218_s20 + $0x238] sm:$0xff]   ;;  %v5058_v19 = vld [vmem:[%s5218_s20 + $0x240] sm:$0xff]  }
  0x16   : > { %v5059_v20 = vld [vmem:[%s5218_s20 + $0x48] sm:$0xff]   ;;  %v5061_v22 = vld [vmem:[%s5218_s20 + $0x50] sm:$0xff]   ;;  %v5063_v24 = vld [vmem:[%s5218_s20 + $0x58] sm:$0xff]  }
  0x17   : > { %v5060_v21 = vld [vmem:[%s5218_s20 + $0x248] sm:$0xff]   ;;  %v5062_v23 = vld [vmem:[%s5218_s20 + $0x250] sm:$0xff]   ;;  %v5064_v25 = vld [vmem:[%s5218_s20 + $0x258] sm:$0xff]  }
  0x18   : > { %v5065_v26 = vld [vmem:[%s5218_s20 + $0x60] sm:$0xff]   ;;  %v5067_v28 = vld [vmem:[%s5218_s20 + $0x68] sm:$0xff]   ;;  %v5069_v30 = vld [vmem:[%s5218_s20 + $0x70] sm:$0xff]  }
  0x19   : > { %v5066_v27 = vld [vmem:[%s5218_s20 + $0x260] sm:$0xff]   ;;  %v5068_v29 = vld [vmem:[%s5218_s20 + $0x268] sm:$0xff]   ;;  %v5070_v31 = vld [vmem:[%s5218_s20 + $0x270] sm:$0xff]  }
  0x1a   : > { %4778 = vmatmul.mubr.msk.bf16.gmra.mrb[4].mxu0 %vm1079_vm1, %v5047_v8  ;;  %v5071_v32 = vld [vmem:[%s5218_s20 + $0x78] sm:$0xff]   ;;  %v5073_v34 = vld [vmem:[%s5218_s20 + $0x80] sm:$0xff]   ;;  %v5075_v36 = vld [vmem:[%s5218_s20 + $0x88] sm:$0xff]  }
  0x1b   : > { %4906 = vmatmul.mubr.msk.bf16.gmra.mrb[4].mxu1 %vm1079_vm1, %v5048_v9  ;;  %4781 = vmatprep.mubr.msk.bf16.mxu0 %vm1079_vm1, %v5049_v10  ;;  %v5072_v33 = vld [vmem:[%s5218_s20 + $0x278] sm:$0xff]   ;;  %v5074_v35 = vld [vmem:[%s5218_s20 + $0x280] sm:$0xff]   ;;  %v5076_v37 = vld [vmem:[%s5218_s20 + $0x288] sm:$0xff]  }
  0x1c   : > { %4909 = vmatprep.mubr.msk.bf16.mxu1 %vm1079_vm1, %v5050_v11  ;;  %v5077_v38 = vld [vmem:[%s5218_s20 + $0x90] sm:$0xff]   ;;  %v5079_v40 = vld [vmem:[%s5218_s20 + $0x98] sm:$0xff]   ;;  %v5081_v42 = vld [vmem:[%s5218_s20 + $0xa0] sm:$0xff]  }
  0x1d   : > { %v5078_v39 = vld [vmem:[%s5218_s20 + $0x290] sm:$0xff]   ;;  %v5080_v41 = vld [vmem:[%s5218_s20 + $0x298] sm:$0xff]   ;;  %v5082_v43 = vld [vmem:[%s5218_s20 + $0x2a0] sm:$0xff]  }
  0x1e   : > { %v5083_v44 = vld [vmem:[%s5218_s20 + $0xa8] sm:$0xff]   ;;  %v5085_v46 = vld [vmem:[%s5218_s20 + $0xb0] sm:$0xff]   ;;  %v5087_v48 = vld [vmem:[%s5218_s20 + $0xb8] sm:$0xff]  }
  0x1f   : > { %v5084_v45 = vld [vmem:[%s5218_s20 + $0x2a8] sm:$0xff]   ;;  %v5086_v47 = vld [vmem:[%s5218_s20 + $0x2b0] sm:$0xff]   ;;  %v5088_v49 = vld [vmem:[%s5218_s20 + $0x2b8] sm:$0xff]  }
  0x20   : > { %v5089_v50 = vld [vmem:[%s5218_s20 + $0xc0] sm:$0xff]   ;;  %v5091_v52 = vld [vmem:[%s5218_s20 + $0xc8] sm:$0xff]   ;;  %v5093_v54 = vld [vmem:[%s5218_s20 + $0xd0] sm:$0xff]  }
  0x21   : > { %v5090_v51 = vld [vmem:[%s5218_s20 + $0x2c0] sm:$0xff]   ;;  %v5092_v53 = vld [vmem:[%s5218_s20 + $0x2c8] sm:$0xff]   ;;  %v5094_v55 = vld [vmem:[%s5218_s20 + $0x2d0] sm:$0xff]  }
  0x22   : > { %4782 = vmatmul.mubr.msk.bf16.gmra.mrb[8].mxu0 %vm1079_vm1, %v5051_v12  ;;  %v5095_v56 = vld [vmem:[%s5218_s20 + $0xd8] sm:$0xff]   ;;  %v5097_v58 = vld [vmem:[%s5218_s20 + $0xe0] sm:$0xff]   ;;  %v5099_v60 = vld [vmem:[%s5218_s20 + $0xe8] sm:$0xff]  }
  0x23   : > { %4910 = vmatmul.mubr.msk.bf16.gmra.mrb[8].mxu1 %vm1079_vm1, %v5052_v13  ;;  %4785 = vmatprep.mubr.msk.bf16.mxu0 %vm1079_vm1, %v5053_v14  ;;  %v5096_v57 = vld [vmem:[%s5218_s20 + $0x2d8] sm:$0xff]   ;;  %v5098_v59 = vld [vmem:[%s5218_s20 + $0x2e0] sm:$0xff]   ;;  %v5100_v61 = vld [vmem:[%s5218_s20 + $0x2e8] sm:$0xff]  }
  0x24   : > { %4913 = vmatprep.mubr.msk.bf16.mxu1 %vm1079_vm1, %v5054_v15  ;;  %v5101_v62 = vld [vmem:[%s5218_s20 + $0xf0] sm:$0xff]   ;;  %v5103_v0 = vld [vmem:[%s5218_s20 + $0xf8] sm:$0xff]   ;;  %v5105_v2 = vld [vmem:[%s5218_s20 + $0x100] sm:$0xff]  }
  0x25   : > { %v5102_v63 = vld [vmem:[%s5218_s20 + $0x2f0] sm:$0xff]   ;;  %v5104_v1 = vld [vmem:[%s5218_s20 + $0x2f8] sm:$0xff]   ;;  %v5106_v3 = vld [vmem:[%s5218_s20 + $0x300] sm:$0xff]  }
  0x26   : > { %v5107_v4 = vld [vmem:[%s5218_s20 + $0x108] sm:$0xff]   ;;  %v5109_v6 = vld [vmem:[%s5218_s20 + $0x110] sm:$0xff]   ;;  %v5111_v8 = vld [vmem:[%s5218_s20 + $0x118] sm:$0xff]  }
  0x27   : > { %v5108_v5 = vld [vmem:[%s5218_s20 + $0x308] sm:$0xff]   ;;  %v5110_v7 = vld [vmem:[%s5218_s20 + $0x310] sm:$0xff]   ;;  %v5112_v9 = vld [vmem:[%s5218_s20 + $0x318] sm:$0xff]  }
  0x28   : > { %v5113_v10 = vld [vmem:[%s5218_s20 + $0x120] sm:$0xff]   ;;  %v5115_v12 = vld [vmem:[%s5218_s20 + $0x128] sm:$0xff]   ;;  %v5117_v14 = vld [vmem:[%s5218_s20 + $0x130] sm:$0xff]  }
  0x29   : > { %v5114_v11 = vld [vmem:[%s5218_s20 + $0x320] sm:$0xff]   ;;  %v5116_v13 = vld [vmem:[%s5218_s20 + $0x328] sm:$0xff]   ;;  %v5118_v15 = vld [vmem:[%s5218_s20 + $0x330] sm:$0xff]  }
  0x2a   : > { %4786 = vmatmul.mubr.msk.bf16.gmra.mrb[12].mxu0 %vm1079_vm1, %v5055_v16  ;;  %v5119_v16 = vld [vmem:[%s5218_s20 + $0x138] sm:$0xff]  }
  0x2b   : > { %4914 = vmatmul.mubr.msk.bf16.gmra.mrb[12].mxu1 %vm1079_vm1, %v5056_v17  ;;  %4789 = vmatprep.mubr.msk.bf16.mxu0 %vm1079_vm1, %v5057_v18  ;;  %v5120_v17 = vld [vmem:[%s5218_s20 + $0x338] sm:$0xff]   ;;  %v5121_v18 = vld [vmem:[%s5218_s20 + $0x140] sm:$0xff]  }
  0x2c   : > { %4917 = vmatprep.mubr.msk.bf16.mxu1 %vm1079_vm1, %v5058_v19  ;;  %v5122_v19 = vld [vmem:[%s5218_s20 + $0x340] sm:$0xff]  }
  0x32   : > { %4790 = vmatmul.mubr.msk.bf16.gmra.mrb[16].mxu0 %vm1079_vm1, %v5059_v20  ;;  %v5123_v20 = vld [vmem:[%s5218_s20 + $0x148] sm:$0xff]  }
  0x33   : > { %4918 = vmatmul.mubr.msk.bf16.gmra.mrb[16].mxu1 %vm1079_vm1, %v5060_v21  ;;  %4793 = vmatprep.mubr.msk.bf16.mxu0 %vm1079_vm1, %v5061_v22  ;;  %v5124_v21 = vld [vmem:[%s5218_s20 + $0x348] sm:$0xff]   ;;  %v5125_v22 = vld [vmem:[%s5218_s20 + $0x150] sm:$0xff]  }
  0x34   : > { %4921 = vmatprep.mubr.msk.bf16.mxu1 %vm1079_vm1, %v5062_v23  ;;  %v5126_v23 = vld [vmem:[%s5218_s20 + $0x350] sm:$0xff]  }
  0x3a   : > { %4794 = vmatmul.mubr.msk.bf16.gmra.mrb[20].mxu0 %vm1079_vm1, %v5063_v24  ;;  %v5127_v24 = vld [vmem:[%s5218_s20 + $0x158] sm:$0xff]  }
  0x3b   : > { %4922 = vmatmul.mubr.msk.bf16.gmra.mrb[20].mxu1 %vm1079_vm1, %v5064_v25  ;;  %4797 = vmatprep.mubr.msk.bf16.mxu0 %vm1079_vm1, %v5065_v26  ;;  %v5128_v25 = vld [vmem:[%s5218_s20 + $0x358] sm:$0xff]   ;;  %v5129_v26 = vld [vmem:[%s5218_s20 + $0x160] sm:$0xff]  }
  0x3c   : > { %4925 = vmatprep.mubr.msk.bf16.mxu1 %vm1079_vm1, %v5066_v27  ;;  %v5130_v27 = vld [vmem:[%s5218_s20 + $0x360] sm:$0xff]  }
  0x42   : > { %4798 = vmatmul.mubr.msk.bf16.gmra.mrb[24].mxu0 %vm1079_vm1, %v5067_v28  ;;  %v5131_v28 = vld [vmem:[%s5218_s20 + $0x168] sm:$0xff]  }
  0x43   : > { %4926 = vmatmul.mubr.msk.bf16.gmra.mrb[24].mxu1 %vm1079_vm1, %v5068_v29  ;;  %4801 = vmatprep.mubr.msk.bf16.mxu0 %vm1079_vm1, %v5069_v30  ;;  %v5132_v29 = vld [vmem:[%s5218_s20 + $0x368] sm:$0xff]   ;;  %v5133_v30 = vld [vmem:[%s5218_s20 + $0x170] sm:$0xff]  }
  0x44   : > { %4929 = vmatprep.mubr.msk.bf16.mxu1 %vm1079_vm1, %v5070_v31  ;;  %v5134_v31 = vld [vmem:[%s5218_s20 + $0x370] sm:$0xff]  }
  0x4a   : > { %4802 = vmatmul.mubr.msk.bf16.gmra.mrb[28].mxu0 %vm1079_vm1, %v5071_v32  ;;  %v5135_v32 = vld [vmem:[%s5218_s20 + $0x178] sm:$0xff]  }
  0x4b   : > { %4930 = vmatmul.mubr.msk.bf16.gmra.mrb[28].mxu1 %vm1079_vm1, %v5072_v33  ;;  %4805 = vmatprep.mubr.msk.bf16.mxu0 %vm1079_vm1, %v5073_v34  ;;  %v5136_v33 = vld [vmem:[%s5218_s20 + $0x378] sm:$0xff]   ;;  %v5137_v34 = vld [vmem:[%s5218_s20 + $0x180] sm:$0xff]  }
  0x4c   : > { %4933 = vmatprep.mubr.msk.bf16.mxu1 %vm1079_vm1, %v5074_v35  ;;  %v5138_v35 = vld [vmem:[%s5218_s20 + $0x380] sm:$0xff]  }
  0x52   : > { %4806 = vmatmul.mubr.msk.bf16.gmra.mrb[32].mxu0 %vm1079_vm1, %v5075_v36  ;;  %v5139_v36 = vld [vmem:[%s5218_s20 + $0x188] sm:$0xff]  }
  0x53   : > { %4934 = vmatmul.mubr.msk.bf16.gmra.mrb[32].mxu1 %vm1079_vm1, %v5076_v37  ;;  %4809 = vmatprep.mubr.msk.bf16.mxu0 %vm1079_vm1, %v5077_v38  ;;  %v5140_v37 = vld [vmem:[%s5218_s20 + $0x388] sm:$0xff]   ;;  %v5141_v38 = vld [vmem:[%s5218_s20 + $0x190] sm:$0xff]  }
  0x54   : > { %4937 = vmatprep.mubr.msk.bf16.mxu1 %vm1079_vm1, %v5078_v39  ;;  %v5142_v39 = vld [vmem:[%s5218_s20 + $0x390] sm:$0xff]  }
  0x5a   : > { %4810 = vmatmul.mubr.msk.bf16.gmra.mrb[36].mxu0 %vm1079_vm1, %v5079_v40  ;;  %v5143_v40 = vld [vmem:[%s5218_s20 + $0x198] sm:$0xff]  }
  0x5b   : > { %4938 = vmatmul.mubr.msk.bf16.gmra.mrb[36].mxu1 %vm1079_vm1, %v5080_v41  ;;  %4813 = vmatprep.mubr.msk.bf16.mxu0 %vm1079_vm1, %v5081_v42  ;;  %v5144_v41 = vld [vmem:[%s5218_s20 + $0x398] sm:$0xff]   ;;  %v5145_v42 = vld [vmem:[%s5218_s20 + $0x1a0] sm:$0xff]  }
  0x5c   : > { %4941 = vmatprep.mubr.msk.bf16.mxu1 %vm1079_vm1, %v5082_v43  ;;  %v5146_v43 = vld [vmem:[%s5218_s20 + $0x3a0] sm:$0xff]  }
  0x62   : > { %4814 = vmatmul.mubr.msk.bf16.gmra.mrb[40].mxu0 %vm1079_vm1, %v5083_v44  ;;  %v5147_v44 = vld [vmem:[%s5218_s20 + $0x1a8] sm:$0xff]  }
  0x63   : > { %4942 = vmatmul.mubr.msk.bf16.gmra.mrb[40].mxu1 %vm1079_vm1, %v5084_v45  ;;  %4817 = vmatprep.mubr.msk.bf16.mxu0 %vm1079_vm1, %v5085_v46  ;;  %v5148_v45 = vld [vmem:[%s5218_s20 + $0x3a8] sm:$0xff]   ;;  %v5149_v46 = vld [vmem:[%s5218_s20 + $0x1b0] sm:$0xff]  }
  0x64   : > { %4945 = vmatprep.mubr.msk.bf16.mxu1 %vm1079_vm1, %v5086_v47  ;;  %v5150_v47 = vld [vmem:[%s5218_s20 + $0x3b0] sm:$0xff]  }
  0x6a   : > { %4818 = vmatmul.mubr.msk.bf16.gmra.mrb[44].mxu0 %vm1079_vm1, %v5087_v48  ;;  %v5441_v48 = vld [vmem:[%s6261_s2] ss:$0 sm:$0xff] }
  0x6b   : > { %4946 = vmatmul.mubr.msk.bf16.gmra.mrb[44].mxu1 %vm1079_vm1, %v5088_v49  ;;  %4821 = vmatprep.mubr.msk.bf16.mxu0 %vm1079_vm1, %v5089_v50 }
  0x6c   : > { %4949 = vmatprep.mubr.msk.bf16.mxu1 %vm1079_vm1, %v5090_v51 }
  0x72   : > { %4822 = vmatmul.mubr.msk.bf16.gmra.mrb[48].mxu0 %vm1079_vm1, %v5091_v52 }
  0x73   : > { %4950 = vmatmul.mubr.msk.bf16.gmra.mrb[48].mxu1 %vm1079_vm1, %v5092_v53  ;;  %4825 = vmatprep.mubr.msk.bf16.mxu0 %vm1079_vm1, %v5093_v54  ;;  %v5151_v53 = vld [vmem:[%s5218_s20 + $0x1b8] sm:$0xff]  }
  0x74   : > { %4953 = vmatprep.mubr.msk.bf16.mxu1 %vm1079_vm1, %v5094_v55 }
  0x7a   : > { %4826 = vmatmul.mubr.msk.bf16.gmra.mrb[52].mxu0 %vm1079_vm1, %v5095_v56 }
  0x7b   : > { %4954 = vmatmul.mubr.msk.bf16.gmra.mrb[52].mxu1 %vm1079_vm1, %v5096_v57  ;;  %4829 = vmatprep.mubr.msk.bf16.mxu0 %vm1079_vm1, %v5097_v58  ;;  %v5152_v58 = vld [vmem:[%s5218_s20 + $0x3b8] sm:$0xff]  }
  0x7c   : > { %4957 = vmatprep.mubr.msk.bf16.mxu1 %vm1079_vm1, %v5098_v59  ;;  %v5153_v59 = vld [vmem:[%s5218_s20 + $0x1c0] sm:$0xff]  }
  0x82   : > { %4830 = vmatmul.mubr.msk.bf16.gmra.mrb[56].mxu0 %vm1079_vm1, %v5099_v60 }
  0x83   : > { %4958 = vmatmul.mubr.msk.bf16.gmra.mrb[56].mxu1 %vm1079_vm1, %v5100_v61  ;;  %4833 = vmatprep.mubr.msk.bf16.mxu0 %vm1079_vm1, %v5101_v62 }
  0x84   : > { %4961 = vmatprep.mubr.msk.bf16.mxu1 %vm1079_vm1, %v5102_v63 }
  0x8a   : > { %4834 = vmatmul.mubr.msk.bf16.gmra.mrb[60].mxu0 %vm1079_vm1, %v5103_v0 }
  0x8b   : > { %4962 = vmatmul.mubr.msk.bf16.gmra.mrb[60].mxu1 %vm1079_vm1, %v5104_v1  ;;  %4837 = vmatprep.mubr.msk.bf16.mxu0 %vm1079_vm1, %v5105_v2  ;;  %v5154_v1 = vld [vmem:[%s5218_s20 + $0x3c0] sm:$0xff]  }
  0x8c   : > { %4965 = vmatprep.mubr.msk.bf16.mxu1 %vm1079_vm1, %v5106_v3 }
  0x92   : > { %4838 = vmatmul.mubr.msk.bf16.gmra.mrb[64].mxu0 %vm1079_vm1, %v5107_v4 }
  0x93   : > { %4966 = vmatmul.mubr.msk.bf16.gmra.mrb[64].mxu1 %vm1079_vm1, %v5108_v5  ;;  %4841 = vmatprep.mubr.msk.bf16.mxu0 %vm1079_vm1, %v5109_v6 }
  0x94   : > { %4969 = vmatprep.mubr.msk.bf16.mxu1 %vm1079_vm1, %v5110_v7 }
  0x9a   : > { %4842 = vmatmul.mubr.msk.bf16.gmra.mrb[68].mxu0 %vm1079_vm1, %v5111_v8 }
  0x9b   : > { %4970 = vmatmul.mubr.msk.bf16.gmra.mrb[68].mxu1 %vm1079_vm1, %v5112_v9  ;;  %4845 = vmatprep.mubr.msk.bf16.mxu0 %vm1079_vm1, %v5113_v10 }
  0x9c   : > { %4973 = vmatprep.mubr.msk.bf16.mxu1 %vm1079_vm1, %v5114_v11 }
  0xa2   : > { %4846 = vmatmul.mubr.msk.bf16.gmra.mrb[72].mxu0 %vm1079_vm1, %v5115_v12 }
  0xa3   : > { %4974 = vmatmul.mubr.msk.bf16.gmra.mrb[72].mxu1 %vm1079_vm1, %v5116_v13  ;;  %4849 = vmatprep.mubr.msk.bf16.mxu0 %vm1079_vm1, %v5117_v14 }
  0xa4   : > { %4977 = vmatprep.mubr.msk.bf16.mxu1 %vm1079_vm1, %v5118_v15 }
  0xaa   : > { %4850 = vmatmul.mubr.msk.bf16.gmra.mrb[76].mxu0 %vm1079_vm1, %v5119_v16 }
  0xab   : > { %4978 = vmatmul.mubr.msk.bf16.gmra.mrb[76].mxu1 %vm1079_vm1, %v5120_v17  ;;  %4853 = vmatprep.mubr.msk.bf16.mxu0 %vm1079_vm1, %v5121_v18  ;;  %v5155_v17 = vld [vmem:[%s5218_s20 + $0x1c8] sm:$0xff]  }
  0xac   : > { %4981 = vmatprep.mubr.msk.bf16.mxu1 %vm1079_vm1, %v5122_v19 }
  0xb2   : > { %4854 = vmatmul.mubr.msk.bf16.gmra.mrb[80].mxu0 %vm1079_vm1, %v5123_v20 }
  0xb3   : > { %4982 = vmatmul.mubr.msk.bf16.gmra.mrb[80].mxu1 %vm1079_vm1, %v5124_v21  ;;  %4857 = vmatprep.mubr.msk.bf16.mxu0 %vm1079_vm1, %v5125_v22  ;;  %v5156_v22 = vld [vmem:[%s5218_s20 + $0x3c8] sm:$0xff]  }
  0xb4   : > { %4985 = vmatprep.mubr.msk.bf16.mxu1 %vm1079_vm1, %v5126_v23  ;;  %v5157_v23 = vld [vmem:[%s5218_s20 + $0x1d0] sm:$0xff]  }
  0xba   : > { %4858 = vmatmul.mubr.msk.bf16.gmra.mrb[84].mxu0 %vm1079_vm1, %v5127_v24 }
  0xbb   : > { %4986 = vmatmul.mubr.msk.bf16.gmra.mrb[84].mxu1 %vm1079_vm1, %v5128_v25  ;;  %4861 = vmatprep.mubr.msk.bf16.mxu0 %vm1079_vm1, %v5129_v26 }
  0xbc   : > { %4989 = vmatprep.mubr.msk.bf16.mxu1 %vm1079_vm1, %v5130_v27 }
  0xc2   : > { %4862 = vmatmul.mubr.msk.bf16.gmra.mrb[88].mxu0 %vm1079_vm1, %v5131_v28 }
  0xc3   : > { %4990 = vmatmul.mubr.msk.bf16.gmra.mrb[88].mxu1 %vm1079_vm1, %v5132_v29  ;;  %4865 = vmatprep.mubr.msk.bf16.mxu0 %vm1079_vm1, %v5133_v30  ;;  %v5158_v29 = vld [vmem:[%s5218_s20 + $0x3d0] sm:$0xff]  }
  0xc4   : > { %4993 = vmatprep.mubr.msk.bf16.mxu1 %vm1079_vm1, %v5134_v31 }
  0xca   : > { %4866 = vmatmul.mubr.msk.bf16.gmra.mrb[92].mxu0 %vm1079_vm1, %v5135_v32 }
  0xcb   : > { %4994 = vmatmul.mubr.msk.bf16.gmra.mrb[92].mxu1 %vm1079_vm1, %v5136_v33  ;;  %4869 = vmatprep.mubr.msk.bf16.mxu0 %vm1079_vm1, %v5137_v34 }
  0xcc   : > { %4997 = vmatprep.mubr.msk.bf16.mxu1 %vm1079_vm1, %v5138_v35 }
  0xd2   : > { %4870 = vmatmul.mubr.msk.bf16.gmra.mrb[96].mxu0 %vm1079_vm1, %v5139_v36 }
  0xd3   : > { %4998 = vmatmul.mubr.msk.bf16.gmra.mrb[96].mxu1 %vm1079_vm1, %v5140_v37  ;;  %4873 = vmatprep.mubr.msk.bf16.mxu0 %vm1079_vm1, %v5141_v38 }
  0xd4   : > { %5001 = vmatprep.mubr.msk.bf16.mxu1 %vm1079_vm1, %v5142_v39 }
  0xda   : > { %4874 = vmatmul.mubr.msk.bf16.gmra.mrb[100].mxu0 %vm1079_vm1, %v5143_v40 }
  0xdb   : > { %5002 = vmatmul.mubr.msk.bf16.gmra.mrb[100].mxu1 %vm1079_vm1, %v5144_v41  ;;  %4877 = vmatprep.mubr.msk.bf16.mxu0 %vm1079_vm1, %v5145_v42 }
  0xdc   : > { %5005 = vmatprep.mubr.msk.bf16.mxu1 %vm1079_vm1, %v5146_v43 }
  0xe2   : > { %4878 = vmatmul.mubr.msk.bf16.gmra.mrb[104].mxu0 %vm1079_vm1, %v5147_v44 }
  0xe3   : > { %5006 = vmatmul.mubr.msk.bf16.gmra.mrb[104].mxu1 %vm1079_vm1, %v5148_v45  ;;  %4881 = vmatprep.mubr.msk.bf16.mxu0 %vm1079_vm1, %v5149_v46  ;;  %v5159_v45 = vld [vmem:[%s5218_s20 + $0x1d8] sm:$0xff]  }
  0xe4   : > { %5009 = vmatprep.mubr.msk.bf16.mxu1 %vm1079_vm1, %v5150_v47 }
  0xe5   : > { %v4775_v49 = vpop.f32.mrb[0].mxu0 }
  0xe6   : > { %v1511_v50 = vadd.f32 %v4775_v49, %v5441_v48  ;;  %v4903_v51 = vpop.f32.mrb[0].mxu1  ;;  %v1502_v52 = vpop.f32.mrb[1].mxu0 }
  0xe7   : > { %v2023_v54 = vadd.f32 %v4903_v51, %v5441_v48  ;;  %v1503_v55 = vadd.f32 %v5441_v48, %v1502_v52  ;;  %v2014_v56 = vpop.f32.mrb[1].mxu1  ;;  %v4776_v57 = vpop.f32.mrb[2].mxu0  ;;  %v5160_v51 = vld [vmem:[%s5218_s20 + $0x3d8] sm:$0xff]   ;;  %v5161_v52 = vld [vmem:[%s5218_s20 + $0x1e0] sm:$0xff]  }
  0xe8   : > { %v4388_v60 = vpack.c.bf16 %v1511_v50, %v1511_v50  ;;  %v2015_v61 = vadd.f32 %v5441_v48, %v2014_v56  ;;  %v1514_v62 = vadd.f32 %v4776_v57, %v5441_v48  ;;  %v4904_v63 = vpop.f32.mrb[2].mxu1  ;;  %v1505_v0 = vpop.f32.mrb[3].mxu0 }
  0xe9   : > { %v4516_v2 = vpack.c.bf16 %v2023_v54, %v2023_v54  ;;  %v4386_v3 = vpack.c.bf16 %v1503_v55, %v1503_v55  ;;  %v2026_v4 = vadd.f32 %v4904_v63, %v5441_v48  ;;  %v1506_v5 = vadd.f32 %v5441_v48, %v1505_v0  ;;  %v2017_v6 = vpop.f32.mrb[3].mxu1 }
  0xea   : > { %3552 = vst.msk [vmem:[%s5452_s25 + $0x8] sm:$0xf] %vm3549_vm2, %v4388_v60  ;;  %v4514_v7 = vpack.c.bf16 %v2015_v61, %v2015_v61  ;;  %v4389_v8 = vpack.c.bf16 %v1514_v62, %v1514_v62  ;;  %v2018_v9 = vadd.f32 %v5441_v48, %v2017_v6  ;;  %4882 = vmatmul.mubr.msk.bf16.gmra.mrb[108].mxu0 %vm1079_vm1, %v5151_v53 }
  0xeb   : > { %3680 = vst.msk [vmem:[%s5452_s25 + $0x208] sm:$0xf] %vm3549_vm2, %v4516_v2  ;;  %3550 = vst.msk [vmem:[%s5452_s25] sm:$0xf] %vm3549_vm2, %v4386_v3  ;;  %v4517_v10 = vpack.c.bf16 %v2026_v4, %v2026_v4  ;;  %v4387_v11 = vpack.c.bf16 %v1506_v5, %v1506_v5  ;;  %5010 = vmatmul.mubr.msk.bf16.gmra.mrb[108].mxu1 %vm1079_vm1, %v5152_v58  ;;  %4885 = vmatprep.mubr.msk.bf16.mxu0 %vm1079_vm1, %v5153_v59  ;;  %v5162_v58 = vld [vmem:[%s5218_s20 + $0x3e0] sm:$0xff]  }
  0xec   : > { %3678 = vst.msk [vmem:[%s5452_s25 + $0x200] sm:$0xf] %vm3549_vm2, %v4514_v7  ;;  %3553 = vst.msk [vmem:[%s5452_s25 + $0xc] sm:$0xf] %vm3549_vm2, %v4389_v8  ;;  %v4515_v12 = vpack.c.bf16 %v2018_v9, %v2018_v9  ;;  %5013 = vmatprep.mubr.msk.bf16.mxu1 %vm1079_vm1, %v5154_v1 }
  0xed   : > { %3681 = vst.msk [vmem:[%s5452_s25 + $0x20c] sm:$0xf] %vm3549_vm2, %v4517_v10  ;;  %3551 = vst.msk [vmem:[%s5452_s25 + $0x4] sm:$0xf] %vm3549_vm2, %v4387_v11  ;;  %v4779_v13 = vpop.f32.mrb[4].mxu0  ;;  %v5163_v10 = vld [vmem:[%s5218_s20 + $0x1e8] sm:$0xff]  }
  0xee   : > { %3679 = vst.msk [vmem:[%s5452_s25 + $0x204] sm:$0xf] %vm3549_vm2, %v4515_v12  ;;  %v1527_v14 = vadd.f32 %v4779_v13, %v5441_v48  ;;  %v4907_v15 = vpop.f32.mrb[4].mxu1  ;;  %v1518_v16 = vpop.f32.mrb[5].mxu0 }
  0xef   : > { %v2039_v18 = vadd.f32 %v4907_v15, %v5441_v48  ;;  %v1519_v19 = vadd.f32 %v5441_v48, %v1518_v16  ;;  %v2030_v20 = vpop.f32.mrb[5].mxu1  ;;  %v4780_v21 = vpop.f32.mrb[6].mxu0  ;;  %v5164_v15 = vld [vmem:[%s5218_s20 + $0x3e8] sm:$0xff]   ;;  %v5165_v16 = vld [vmem:[%s5218_s20 + $0x1f0] sm:$0xff]  }
  0xf0   : > { %v4392_v24 = vpack.c.bf16 %v1527_v14, %v1527_v14  ;;  %v2031_v25 = vadd.f32 %v5441_v48, %v2030_v20  ;;  %v1530_v26 = vadd.f32 %v4780_v21, %v5441_v48  ;;  %v4908_v27 = vpop.f32.mrb[6].mxu1  ;;  %v1521_v28 = vpop.f32.mrb[7].mxu0 }
  0xf1   : > { %v4520_v30 = vpack.c.bf16 %v2039_v18, %v2039_v18  ;;  %v4390_v31 = vpack.c.bf16 %v1519_v19, %v1519_v19  ;;  %v2042_v32 = vadd.f32 %v4908_v27, %v5441_v48  ;;  %v1522_v33 = vadd.f32 %v5441_v48, %v1521_v28  ;;  %v2033_v34 = vpop.f32.mrb[7].mxu1 }
  0xf2   : > { %3556 = vst.msk [vmem:[%s5452_s25 + $0x18] sm:$0xf] %vm3549_vm2, %v4392_v24  ;;  %v4518_v35 = vpack.c.bf16 %v2031_v25, %v2031_v25  ;;  %v4393_v36 = vpack.c.bf16 %v1530_v26, %v1530_v26  ;;  %v2034_v37 = vadd.f32 %v5441_v48, %v2033_v34  ;;  %4886 = vmatmul.mubr.msk.bf16.gmra.mrb[112].mxu0 %vm1079_vm1, %v5155_v17 }
  0xf3   : > { %3684 = vst.msk [vmem:[%s5452_s25 + $0x218] sm:$0xf] %vm3549_vm2, %v4520_v30  ;;  %3554 = vst.msk [vmem:[%s5452_s25 + $0x10] sm:$0xf] %vm3549_vm2, %v4390_v31  ;;  %v4521_v38 = vpack.c.bf16 %v2042_v32, %v2042_v32  ;;  %v4391_v39 = vpack.c.bf16 %v1522_v33, %v1522_v33  ;;  %5014 = vmatmul.mubr.msk.bf16.gmra.mrb[112].mxu1 %vm1079_vm1, %v5156_v22  ;;  %4889 = vmatprep.mubr.msk.bf16.mxu0 %vm1079_vm1, %v5157_v23  ;;  %v5166_v22 = vld [vmem:[%s5218_s20 + $0x3f0] sm:$0xff]  }
  0xf4   : > { %3682 = vst.msk [vmem:[%s5452_s25 + $0x210] sm:$0xf] %vm3549_vm2, %v4518_v35  ;;  %3557 = vst.msk [vmem:[%s5452_s25 + $0x1c] sm:$0xf] %vm3549_vm2, %v4393_v36  ;;  %v4519_v40 = vpack.c.bf16 %v2034_v37, %v2034_v37  ;;  %5017 = vmatprep.mubr.msk.bf16.mxu1 %vm1079_vm1, %v5158_v29 }
  0xf5   : > { %3685 = vst.msk [vmem:[%s5452_s25 + $0x21c] sm:$0xf] %vm3549_vm2, %v4521_v38  ;;  %3555 = vst.msk [vmem:[%s5452_s25 + $0x14] sm:$0xf] %vm3549_vm2, %v4391_v39  ;;  %v4783_v41 = vpop.f32.mrb[8].mxu0  ;;  %v5167_v38 = vld [vmem:[%s5218_s20 + $0x1f8] sm:$0xff]  }
  0xf6   : > { %3683 = vst.msk [vmem:[%s5452_s25 + $0x214] sm:$0xf] %vm3549_vm2, %v4519_v40  ;;  %v1543_v42 = vadd.f32 %v4783_v41, %v5441_v48  ;;  %v4911_v43 = vpop.f32.mrb[8].mxu1  ;;  %v1534_v44 = vpop.f32.mrb[9].mxu0 }
  0xf7   : > { %v2055_v46 = vadd.f32 %v4911_v43, %v5441_v48  ;;  %v1535_v47 = vadd.f32 %v5441_v48, %v1534_v44  ;;  %v2046_v49 = vpop.f32.mrb[9].mxu1  ;;  %v4784_v50 = vpop.f32.mrb[10].mxu0  ;;  %v5168_v43 = vld [vmem:[%s5218_s20 + $0x3f8] sm:$0xff]  }
  0xf8   : > { %v4396_v53 = vpack.c.bf16 %v1543_v42, %v1543_v42  ;;  %v2047_v54 = vadd.f32 %v5441_v48, %v2046_v49  ;;  %v1546_v55 = vadd.f32 %v4784_v50, %v5441_v48  ;;  %v4912_v56 = vpop.f32.mrb[10].mxu1  ;;  %v1537_v57 = vpop.f32.mrb[11].mxu0 }
  0xf9   : > { %v4524_v59 = vpack.c.bf16 %v2055_v46, %v2055_v46  ;;  %v4394_v60 = vpack.c.bf16 %v1535_v47, %v1535_v47  ;;  %v2058_v61 = vadd.f32 %v4912_v56, %v5441_v48  ;;  %v1538_v62 = vadd.f32 %v5441_v48, %v1537_v57  ;;  %v2049_v63 = vpop.f32.mrb[11].mxu1 }
  0xfa   : > { %3560 = vst.msk [vmem:[%s5452_s25 + $0x28] sm:$0xf] %vm3549_vm2, %v4396_v53  ;;  %v4522_v0 = vpack.c.bf16 %v2047_v54, %v2047_v54  ;;  %v4397_v1 = vpack.c.bf16 %v1546_v55, %v1546_v55  ;;  %v2050_v2 = vadd.f32 %v5441_v48, %v2049_v63  ;;  %4890 = vmatmul.mubr.msk.bf16.gmra.mrb[116].mxu0 %vm1079_vm1, %v5159_v45 }
  0xfb   : > { %3688 = vst.msk [vmem:[%s5452_s25 + $0x228] sm:$0xf] %vm3549_vm2, %v4524_v59  ;;  %3558 = vst.msk [vmem:[%s5452_s25 + $0x20] sm:$0xf] %vm3549_vm2, %v4394_v60  ;;  %v4525_v3 = vpack.c.bf16 %v2058_v61, %v2058_v61  ;;  %v4395_v4 = vpack.c.bf16 %v1538_v62, %v1538_v62  ;;  %5018 = vmatmul.mubr.msk.bf16.gmra.mrb[116].mxu1 %vm1079_vm1, %v5160_v51  ;;  %4893 = vmatprep.mubr.msk.bf16.mxu0 %vm1079_vm1, %v5161_v52 }
  0xfc   : > { %3686 = vst.msk [vmem:[%s5452_s25 + $0x220] sm:$0xf] %vm3549_vm2, %v4522_v0  ;;  %3561 = vst.msk [vmem:[%s5452_s25 + $0x2c] sm:$0xf] %vm3549_vm2, %v4397_v1  ;;  %v4523_v5 = vpack.c.bf16 %v2050_v2, %v2050_v2  ;;  %5021 = vmatprep.mubr.msk.bf16.mxu1 %vm1079_vm1, %v5162_v58 }
  0xfd   : > { %3689 = vst.msk [vmem:[%s5452_s25 + $0x22c] sm:$0xf] %vm3549_vm2, %v4525_v3  ;;  %3559 = vst.msk [vmem:[%s5452_s25 + $0x24] sm:$0xf] %vm3549_vm2, %v4395_v4  ;;  %v4787_v6 = vpop.f32.mrb[12].mxu0 }
  0xfe   : > { %3687 = vst.msk [vmem:[%s5452_s25 + $0x224] sm:$0xf] %vm3549_vm2, %v4523_v5  ;;  %v1559_v7 = vadd.f32 %v4787_v6, %v5441_v48  ;;  %v4915_v8 = vpop.f32.mrb[12].mxu1  ;;  %v1550_v9 = vpop.f32.mrb[13].mxu0 }
  0xff   : > { %v2071_v11 = vadd.f32 %v4915_v8, %v5441_v48  ;;  %v1551_v12 = vadd.f32 %v5441_v48, %v1550_v9  ;;  %v2062_v13 = vpop.f32.mrb[13].mxu1  ;;  %v4788_v14 = vpop.f32.mrb[14].mxu0 }
 0x100   : > { %v4400_v17 = vpack.c.bf16 %v1559_v7, %v1559_v7  ;;  %v2063_v18 = vadd.f32 %v5441_v48, %v2062_v13  ;;  %v1562_v19 = vadd.f32 %v4788_v14, %v5441_v48  ;;  %v4916_v20 = vpop.f32.mrb[14].mxu1  ;;  %v1553_v21 = vpop.f32.mrb[15].mxu0 }
 0x101   : > { %v4528_v23 = vpack.c.bf16 %v2071_v11, %v2071_v11  ;;  %v4398_v24 = vpack.c.bf16 %v1551_v12, %v1551_v12  ;;  %v2074_v25 = vadd.f32 %v4916_v20, %v5441_v48  ;;  %v1554_v26 = vadd.f32 %v5441_v48, %v1553_v21  ;;  %v2065_v27 = vpop.f32.mrb[15].mxu1 }
 0x102   : > { %3564 = vst.msk [vmem:[%s5452_s25 + $0x38] sm:$0xf] %vm3549_vm2, %v4400_v17  ;;  %v4526_v28 = vpack.c.bf16 %v2063_v18, %v2063_v18  ;;  %v4401_v29 = vpack.c.bf16 %v1562_v19, %v1562_v19  ;;  %v2066_v30 = vadd.f32 %v5441_v48, %v2065_v27  ;;  %4894 = vmatmul.mubr.msk.bf16.gmra.mrb[120].mxu0 %vm1079_vm1, %v5163_v10 }
 0x103   : > { %3692 = vst.msk [vmem:[%s5452_s25 + $0x238] sm:$0xf] %vm3549_vm2, %v4528_v23  ;;  %3562 = vst.msk [vmem:[%s5452_s25 + $0x30] sm:$0xf] %vm3549_vm2, %v4398_v24  ;;  %v4529_v31 = vpack.c.bf16 %v2074_v25, %v2074_v25  ;;  %v4399_v32 = vpack.c.bf16 %v1554_v26, %v1554_v26  ;;  %5022 = vmatmul.mubr.msk.bf16.gmra.mrb[120].mxu1 %vm1079_vm1, %v5164_v15  ;;  %4897 = vmatprep.mubr.msk.bf16.mxu0 %vm1079_vm1, %v5165_v16 }
 0x104   : > { %3690 = vst.msk [vmem:[%s5452_s25 + $0x230] sm:$0xf] %vm3549_vm2, %v4526_v28  ;;  %3565 = vst.msk [vmem:[%s5452_s25 + $0x3c] sm:$0xf] %vm3549_vm2, %v4401_v29  ;;  %v4527_v33 = vpack.c.bf16 %v2066_v30, %v2066_v30  ;;  %5025 = vmatprep.mubr.msk.bf16.mxu1 %vm1079_vm1, %v5166_v22 }
 0x105   : > { %3693 = vst.msk [vmem:[%s5452_s25 + $0x23c] sm:$0xf] %vm3549_vm2, %v4529_v31  ;;  %3563 = vst.msk [vmem:[%s5452_s25 + $0x34] sm:$0xf] %vm3549_vm2, %v4399_v32  ;;  %v4791_v34 = vpop.f32.mrb[16].mxu0 }
 0x106   : > { %3691 = vst.msk [vmem:[%s5452_s25 + $0x234] sm:$0xf] %vm3549_vm2, %v4527_v33  ;;  %v1575_v35 = vadd.f32 %v4791_v34, %v5441_v48  ;;  %v4919_v36 = vpop.f32.mrb[16].mxu1  ;;  %v1566_v37 = vpop.f32.mrb[17].mxu0 }
 0x107   : > { %v2087_v39 = vadd.f32 %v4919_v36, %v5441_v48  ;;  %v1567_v40 = vadd.f32 %v5441_v48, %v1566_v37  ;;  %v2078_v41 = vpop.f32.mrb[17].mxu1  ;;  %v4792_v42 = vpop.f32.mrb[18].mxu0 }
 0x108   : > { %v4404_v44 = vpack.c.bf16 %v1575_v35, %v1575_v35  ;;  %v2079_v45 = vadd.f32 %v5441_v48, %v2078_v41  ;;  %v1578_v46 = vadd.f32 %v4792_v42, %v5441_v48  ;;  %v4920_v47 = vpop.f32.mrb[18].mxu1  ;;  %v1569_v49 = vpop.f32.mrb[19].mxu0 }
 0x109   : > { %v4532_v50 = vpack.c.bf16 %v2087_v39, %v2087_v39  ;;  %v4402_v51 = vpack.c.bf16 %v1567_v40, %v1567_v40  ;;  %v2090_v52 = vadd.f32 %v4920_v47, %v5441_v48  ;;  %v1570_v53 = vadd.f32 %v5441_v48, %v1569_v49  ;;  %v2081_v54 = vpop.f32.mrb[19].mxu1 }
 0x10a   : > { %3568 = vst.msk [vmem:[%s5452_s25 + $0x48] sm:$0xf] %vm3549_vm2, %v4404_v44  ;;  %v4530_v55 = vpack.c.bf16 %v2079_v45, %v2079_v45  ;;  %v4405_v56 = vpack.c.bf16 %v1578_v46, %v1578_v46  ;;  %v2082_v57 = vadd.f32 %v5441_v48, %v2081_v54  ;;  %4898 = vmatmul.mubr.msk.bf16.gmra.mrb[124].mxu0 %vm1079_vm1, %v5167_v38 }
 0x10b   : > { %3696 = vst.msk [vmem:[%s5452_s25 + $0x248] sm:$0xf] %vm3549_vm2, %v4532_v50  ;;  %3566 = vst.msk [vmem:[%s5452_s25 + $0x40] sm:$0xf] %vm3549_vm2, %v4402_v51  ;;  %v4533_v58 = vpack.c.bf16 %v2090_v52, %v2090_v52  ;;  %v4403_v59 = vpack.c.bf16 %v1570_v53, %v1570_v53  ;;  %5026 = vmatmul.mubr.msk.bf16.gmra.mrb[124].mxu1 %vm1079_vm1, %v5168_v43 }
 0x10c   : > { %3694 = vst.msk [vmem:[%s5452_s25 + $0x240] sm:$0xf] %vm3549_vm2, %v4530_v55  ;;  %3569 = vst.msk [vmem:[%s5452_s25 + $0x4c] sm:$0xf] %vm3549_vm2, %v4405_v56  ;;  %v4531_v60 = vpack.c.bf16 %v2082_v57, %v2082_v57 }
 0x10d   : > { %3697 = vst.msk [vmem:[%s5452_s25 + $0x24c] sm:$0xf] %vm3549_vm2, %v4533_v58  ;;  %3567 = vst.msk [vmem:[%s5452_s25 + $0x44] sm:$0xf] %vm3549_vm2, %v4403_v59  ;;  %v4795_v61 = vpop.f32.mrb[20].mxu0 }
 0x10e   : > { %3695 = vst.msk [vmem:[%s5452_s25 + $0x244] sm:$0xf] %vm3549_vm2, %v4531_v60  ;;  %v1591_v62 = vadd.f32 %v4795_v61, %v5441_v48  ;;  %v4923_v63 = vpop.f32.mrb[20].mxu1  ;;  %v1582_v0 = vpop.f32.mrb[21].mxu0 }
 0x10f   : > { %v2103_v1 = vadd.f32 %v4923_v63, %v5441_v48  ;;  %v1583_v2 = vadd.f32 %v5441_v48, %v1582_v0  ;;  %v2094_v3 = vpop.f32.mrb[21].mxu1  ;;  %v4796_v4 = vpop.f32.mrb[22].mxu0 }
 0x110   : > { %v4408_v5 = vpack.c.bf16 %v1591_v62, %v1591_v62  ;;  %v2095_v6 = vadd.f32 %v5441_v48, %v2094_v3  ;;  %v1594_v7 = vadd.f32 %v4796_v4, %v5441_v48  ;;  %v4924_v8 = vpop.f32.mrb[22].mxu1  ;;  %v1585_v9 = vpop.f32.mrb[23].mxu0 }
 0x111   : > { %v4536_v10 = vpack.c.bf16 %v2103_v1, %v2103_v1  ;;  %v4406_v11 = vpack.c.bf16 %v1583_v2, %v1583_v2  ;;  %v2106_v12 = vadd.f32 %v4924_v8, %v5441_v48  ;;  %v1586_v13 = vadd.f32 %v5441_v48, %v1585_v9  ;;  %v2097_v14 = vpop.f32.mrb[23].mxu1 }
 0x112   : > { %3572 = vst.msk [vmem:[%s5452_s25 + $0x58] sm:$0xf] %vm3549_vm2, %v4408_v5  ;;  %v4534_v15 = vpack.c.bf16 %v2095_v6, %v2095_v6  ;;  %v4409_v16 = vpack.c.bf16 %v1594_v7, %v1594_v7  ;;  %v2098_v17 = vadd.f32 %v5441_v48, %v2097_v14 }
 0x113   : > { %3700 = vst.msk [vmem:[%s5452_s25 + $0x258] sm:$0xf] %vm3549_vm2, %v4536_v10  ;;  %3570 = vst.msk [vmem:[%s5452_s25 + $0x50] sm:$0xf] %vm3549_vm2, %v4406_v11  ;;  %v4537_v18 = vpack.c.bf16 %v2106_v12, %v2106_v12  ;;  %v4407_v19 = vpack.c.bf16 %v1586_v13, %v1586_v13 }
 0x114   : > { %3698 = vst.msk [vmem:[%s5452_s25 + $0x250] sm:$0xf] %vm3549_vm2, %v4534_v15  ;;  %3573 = vst.msk [vmem:[%s5452_s25 + $0x5c] sm:$0xf] %vm3549_vm2, %v4409_v16  ;;  %v4535_v20 = vpack.c.bf16 %v2098_v17, %v2098_v17 }
 0x115   : > { %3701 = vst.msk [vmem:[%s5452_s25 + $0x25c] sm:$0xf] %vm3549_vm2, %v4537_v18  ;;  %3571 = vst.msk [vmem:[%s5452_s25 + $0x54] sm:$0xf] %vm3549_vm2, %v4407_v19  ;;  %v4799_v21 = vpop.f32.mrb[24].mxu0 }
 0x116   : > { %3699 = vst.msk [vmem:[%s5452_s25 + $0x254] sm:$0xf] %vm3549_vm2, %v4535_v20  ;;  %v1607_v22 = vadd.f32 %v4799_v21, %v5441_v48  ;;  %v4927_v23 = vpop.f32.mrb[24].mxu1  ;;  %v1598_v24 = vpop.f32.mrb[25].mxu0 }
 0x117   : > { %v2119_v25 = vadd.f32 %v4927_v23, %v5441_v48  ;;  %v1599_v26 = vadd.f32 %v5441_v48, %v1598_v24  ;;  %v2110_v27 = vpop.f32.mrb[25].mxu1  ;;  %v4800_v28 = vpop.f32.mrb[26].mxu0 }
 0x118   : > { %v4412_v29 = vpack.c.bf16 %v1607_v22, %v1607_v22  ;;  %v2111_v30 = vadd.f32 %v5441_v48, %v2110_v27  ;;  %v1610_v31 = vadd.f32 %v4800_v28, %v5441_v48  ;;  %v4928_v32 = vpop.f32.mrb[26].mxu1  ;;  %v1601_v33 = vpop.f32.mrb[27].mxu0 }
 0x119   : > { %v4540_v34 = vpack.c.bf16 %v2119_v25, %v2119_v25  ;;  %v4410_v35 = vpack.c.bf16 %v1599_v26, %v1599_v26  ;;  %v2122_v36 = vadd.f32 %v4928_v32, %v5441_v48  ;;  %v1602_v37 = vadd.f32 %v5441_v48, %v1601_v33  ;;  %v2113_v38 = vpop.f32.mrb[27].mxu1 }
 0x11a   : > { %3576 = vst.msk [vmem:[%s5452_s25 + $0x68] sm:$0xf] %vm3549_vm2, %v4412_v29  ;;  %v4538_v39 = vpack.c.bf16 %v2111_v30, %v2111_v30  ;;  %v4413_v40 = vpack.c.bf16 %v1610_v31, %v1610_v31  ;;  %v2114_v41 = vadd.f32 %v5441_v48, %v2113_v38 }
 0x11b   : > { %3704 = vst.msk [vmem:[%s5452_s25 + $0x268] sm:$0xf] %vm3549_vm2, %v4540_v34  ;;  %3574 = vst.msk [vmem:[%s5452_s25 + $0x60] sm:$0xf] %vm3549_vm2, %v4410_v35  ;;  %v4541_v42 = vpack.c.bf16 %v2122_v36, %v2122_v36  ;;  %v4411_v43 = vpack.c.bf16 %v1602_v37, %v1602_v37 }
 0x11c   : > { %3702 = vst.msk [vmem:[%s5452_s25 + $0x260] sm:$0xf] %vm3549_vm2, %v4538_v39  ;;  %3577 = vst.msk [vmem:[%s5452_s25 + $0x6c] sm:$0xf] %vm3549_vm2, %v4413_v40  ;;  %v4539_v44 = vpack.c.bf16 %v2114_v41, %v2114_v41 }
 0x11d   : > { %3705 = vst.msk [vmem:[%s5452_s25 + $0x26c] sm:$0xf] %vm3549_vm2, %v4541_v42  ;;  %3575 = vst.msk [vmem:[%s5452_s25 + $0x64] sm:$0xf] %vm3549_vm2, %v4411_v43  ;;  %v4803_v45 = vpop.f32.mrb[28].mxu0 }
 0x11e   : > { %3703 = vst.msk [vmem:[%s5452_s25 + $0x264] sm:$0xf] %vm3549_vm2, %v4539_v44  ;;  %v1623_v46 = vadd.f32 %v4803_v45, %v5441_v48  ;;  %v4931_v47 = vpop.f32.mrb[28].mxu1  ;;  %v1614_v49 = vpop.f32.mrb[29].mxu0 }
 0x11f   : > { %v2135_v50 = vadd.f32 %v4931_v47, %v5441_v48  ;;  %v1615_v51 = vadd.f32 %v5441_v48, %v1614_v49  ;;  %v2126_v52 = vpop.f32.mrb[29].mxu1  ;;  %v4804_v53 = vpop.f32.mrb[30].mxu0 }
 0x120   : > { %v4416_v54 = vpack.c.bf16 %v1623_v46, %v1623_v46  ;;  %v2127_v55 = vadd.f32 %v5441_v48, %v2126_v52  ;;  %v1626_v56 = vadd.f32 %v4804_v53, %v5441_v48  ;;  %v4932_v57 = vpop.f32.mrb[30].mxu1  ;;  %v1617_v58 = vpop.f32.mrb[31].mxu0 }
 0x121   : > { %v4544_v59 = vpack.c.bf16 %v2135_v50, %v2135_v50  ;;  %v4414_v60 = vpack.c.bf16 %v1615_v51, %v1615_v51  ;;  %v2138_v61 = vadd.f32 %v4932_v57, %v5441_v48  ;;  %v1618_v62 = vadd.f32 %v5441_v48, %v1617_v58  ;;  %v2129_v63 = vpop.f32.mrb[31].mxu1 }
 0x122   : > { %3580 = vst.msk [vmem:[%s5452_s25 + $0x78] sm:$0xf] %vm3549_vm2, %v4416_v54  ;;  %v4542_v0 = vpack.c.bf16 %v2127_v55, %v2127_v55  ;;  %v4417_v1 = vpack.c.bf16 %v1626_v56, %v1626_v56  ;;  %v2130_v2 = vadd.f32 %v5441_v48, %v2129_v63 }
 0x123   : > { %3708 = vst.msk [vmem:[%s5452_s25 + $0x278] sm:$0xf] %vm3549_vm2, %v4544_v59  ;;  %3578 = vst.msk [vmem:[%s5452_s25 + $0x70] sm:$0xf] %vm3549_vm2, %v4414_v60  ;;  %v4545_v3 = vpack.c.bf16 %v2138_v61, %v2138_v61  ;;  %v4415_v4 = vpack.c.bf16 %v1618_v62, %v1618_v62 }
 0x124   : > { %3706 = vst.msk [vmem:[%s5452_s25 + $0x270] sm:$0xf] %vm3549_vm2, %v4542_v0  ;;  %3581 = vst.msk [vmem:[%s5452_s25 + $0x7c] sm:$0xf] %vm3549_vm2, %v4417_v1  ;;  %v4543_v5 = vpack.c.bf16 %v2130_v2, %v2130_v2 }
 0x125   : > { %3709 = vst.msk [vmem:[%s5452_s25 + $0x27c] sm:$0xf] %vm3549_vm2, %v4545_v3  ;;  %3579 = vst.msk [vmem:[%s5452_s25 + $0x74] sm:$0xf] %vm3549_vm2, %v4415_v4  ;;  %v4807_v6 = vpop.f32.mrb[32].mxu0 }
 0x126   : > { %3707 = vst.msk [vmem:[%s5452_s25 + $0x274] sm:$0xf] %vm3549_vm2, %v4543_v5  ;;  %v1639_v7 = vadd.f32 %v4807_v6, %v5441_v48  ;;  %v4935_v8 = vpop.f32.mrb[32].mxu1  ;;  %v1630_v9 = vpop.f32.mrb[33].mxu0 }
 0x127   : > { %v2151_v10 = vadd.f32 %v4935_v8, %v5441_v48  ;;  %v1631_v11 = vadd.f32 %v5441_v48, %v1630_v9  ;;  %v2142_v12 = vpop.f32.mrb[33].mxu1  ;;  %v4808_v13 = vpop.f32.mrb[34].mxu0 }
 0x128   : > { %v4420_v14 = vpack.c.bf16 %v1639_v7, %v1639_v7  ;;  %v2143_v15 = vadd.f32 %v5441_v48, %v2142_v12  ;;  %v1642_v16 = vadd.f32 %v4808_v13, %v5441_v48  ;;  %v4936_v17 = vpop.f32.mrb[34].mxu1  ;;  %v1633_v18 = vpop.f32.mrb[35].mxu0 }
 0x129   : > { %v4548_v19 = vpack.c.bf16 %v2151_v10, %v2151_v10  ;;  %v4418_v20 = vpack.c.bf16 %v1631_v11, %v1631_v11  ;;  %v2154_v21 = vadd.f32 %v4936_v17, %v5441_v48  ;;  %v1634_v22 = vadd.f32 %v5441_v48, %v1633_v18  ;;  %v2145_v23 = vpop.f32.mrb[35].mxu1 }
 0x12a   : > { %3584 = vst.msk [vmem:[%s5452_s25 + $0x88] sm:$0xf] %vm3549_vm2, %v4420_v14  ;;  %v4546_v24 = vpack.c.bf16 %v2143_v15, %v2143_v15  ;;  %v4421_v25 = vpack.c.bf16 %v1642_v16, %v1642_v16  ;;  %v2146_v26 = vadd.f32 %v5441_v48, %v2145_v23 }
 0x12b   : > { %3712 = vst.msk [vmem:[%s5452_s25 + $0x288] sm:$0xf] %vm3549_vm2, %v4548_v19  ;;  %3582 = vst.msk [vmem:[%s5452_s25 + $0x80] sm:$0xf] %vm3549_vm2, %v4418_v20  ;;  %v4549_v27 = vpack.c.bf16 %v2154_v21, %v2154_v21  ;;  %v4419_v28 = vpack.c.bf16 %v1634_v22, %v1634_v22 }
 0x12c   : > { %3710 = vst.msk [vmem:[%s5452_s25 + $0x280] sm:$0xf] %vm3549_vm2, %v4546_v24  ;;  %3585 = vst.msk [vmem:[%s5452_s25 + $0x8c] sm:$0xf] %vm3549_vm2, %v4421_v25  ;;  %v4547_v29 = vpack.c.bf16 %v2146_v26, %v2146_v26 }
 0x12d   : > { %3713 = vst.msk [vmem:[%s5452_s25 + $0x28c] sm:$0xf] %vm3549_vm2, %v4549_v27  ;;  %3583 = vst.msk [vmem:[%s5452_s25 + $0x84] sm:$0xf] %vm3549_vm2, %v4419_v28  ;;  %v4811_v30 = vpop.f32.mrb[36].mxu0 }
 0x12e   : > { %3711 = vst.msk [vmem:[%s5452_s25 + $0x284] sm:$0xf] %vm3549_vm2, %v4547_v29  ;;  %v1655_v31 = vadd.f32 %v4811_v30, %v5441_v48  ;;  %v4939_v32 = vpop.f32.mrb[36].mxu1  ;;  %v1646_v33 = vpop.f32.mrb[37].mxu0 }
 0x12f   : > { %v2167_v34 = vadd.f32 %v4939_v32, %v5441_v48  ;;  %v1647_v35 = vadd.f32 %v5441_v48, %v1646_v33  ;;  %v2158_v36 = vpop.f32.mrb[37].mxu1  ;;  %v4812_v37 = vpop.f32.mrb[38].mxu0 }
 0x130   : > { %v4424_v38 = vpack.c.bf16 %v1655_v31, %v1655_v31  ;;  %v2159_v39 = vadd.f32 %v5441_v48, %v2158_v36  ;;  %v1658_v40 = vadd.f32 %v4812_v37, %v5441_v48  ;;  %v4940_v41 = vpop.f32.mrb[38].mxu1  ;;  %v1649_v42 = vpop.f32.mrb[39].mxu0 }
 0x131   : > { %v4552_v43 = vpack.c.bf16 %v2167_v34, %v2167_v34  ;;  %v4422_v44 = vpack.c.bf16 %v1647_v35, %v1647_v35  ;;  %v2170_v45 = vadd.f32 %v4940_v41, %v5441_v48  ;;  %v1650_v46 = vadd.f32 %v5441_v48, %v1649_v42  ;;  %v2161_v47 = vpop.f32.mrb[39].mxu1 }
 0x132   : > { %3588 = vst.msk [vmem:[%s5452_s25 + $0x98] sm:$0xf] %vm3549_vm2, %v4424_v38  ;;  %v4550_v49 = vpack.c.bf16 %v2159_v39, %v2159_v39  ;;  %v4425_v50 = vpack.c.bf16 %v1658_v40, %v1658_v40  ;;  %v2162_v51 = vadd.f32 %v5441_v48, %v2161_v47 }
 0x133   : > { %3716 = vst.msk [vmem:[%s5452_s25 + $0x298] sm:$0xf] %vm3549_vm2, %v4552_v43  ;;  %3586 = vst.msk [vmem:[%s5452_s25 + $0x90] sm:$0xf] %vm3549_vm2, %v4422_v44  ;;  %v4553_v52 = vpack.c.bf16 %v2170_v45, %v2170_v45  ;;  %v4423_v53 = vpack.c.bf16 %v1650_v46, %v1650_v46 }
 0x134   : > { %3714 = vst.msk [vmem:[%s5452_s25 + $0x290] sm:$0xf] %vm3549_vm2, %v4550_v49  ;;  %3589 = vst.msk [vmem:[%s5452_s25 + $0x9c] sm:$0xf] %vm3549_vm2, %v4425_v50  ;;  %v4551_v54 = vpack.c.bf16 %v2162_v51, %v2162_v51 }
 0x135   : > { %3717 = vst.msk [vmem:[%s5452_s25 + $0x29c] sm:$0xf] %vm3549_vm2, %v4553_v52  ;;  %3587 = vst.msk [vmem:[%s5452_s25 + $0x94] sm:$0xf] %vm3549_vm2, %v4423_v53  ;;  %v4815_v55 = vpop.f32.mrb[40].mxu0 }
 0x136   : > { %3715 = vst.msk [vmem:[%s5452_s25 + $0x294] sm:$0xf] %vm3549_vm2, %v4551_v54  ;;  %v1671_v56 = vadd.f32 %v4815_v55, %v5441_v48  ;;  %v4943_v57 = vpop.f32.mrb[40].mxu1  ;;  %v1662_v58 = vpop.f32.mrb[41].mxu0 }
 0x137   : > { %v2183_v59 = vadd.f32 %v4943_v57, %v5441_v48  ;;  %v1663_v60 = vadd.f32 %v5441_v48, %v1662_v58  ;;  %v2174_v61 = vpop.f32.mrb[41].mxu1  ;;  %v4816_v62 = vpop.f32.mrb[42].mxu0 }
 0x138   : > { %v4428_v63 = vpack.c.bf16 %v1671_v56, %v1671_v56  ;;  %v2175_v0 = vadd.f32 %v5441_v48, %v2174_v61  ;;  %v1674_v1 = vadd.f32 %v4816_v62, %v5441_v48  ;;  %v4944_v2 = vpop.f32.mrb[42].mxu1  ;;  %v1665_v3 = vpop.f32.mrb[43].mxu0 }
 0x139   : > { %v4556_v4 = vpack.c.bf16 %v2183_v59, %v2183_v59  ;;  %v4426_v5 = vpack.c.bf16 %v1663_v60, %v1663_v60  ;;  %v2186_v6 = vadd.f32 %v4944_v2, %v5441_v48  ;;  %v1666_v7 = vadd.f32 %v5441_v48, %v1665_v3  ;;  %v2177_v8 = vpop.f32.mrb[43].mxu1 }
 0x13a   : > { %3592 = vst.msk [vmem:[%s5452_s25 + $0xa8] sm:$0xf] %vm3549_vm2, %v4428_v63  ;;  %v4554_v9 = vpack.c.bf16 %v2175_v0, %v2175_v0  ;;  %v4429_v10 = vpack.c.bf16 %v1674_v1, %v1674_v1  ;;  %v2178_v11 = vadd.f32 %v5441_v48, %v2177_v8 }
 0x13b   : > { %3720 = vst.msk [vmem:[%s5452_s25 + $0x2a8] sm:$0xf] %vm3549_vm2, %v4556_v4  ;;  %3590 = vst.msk [vmem:[%s5452_s25 + $0xa0] sm:$0xf] %vm3549_vm2, %v4426_v5  ;;  %v4557_v12 = vpack.c.bf16 %v2186_v6, %v2186_v6  ;;  %v4427_v13 = vpack.c.bf16 %v1666_v7, %v1666_v7 }
 0x13c   : > { %3718 = vst.msk [vmem:[%s5452_s25 + $0x2a0] sm:$0xf] %vm3549_vm2, %v4554_v9  ;;  %3593 = vst.msk [vmem:[%s5452_s25 + $0xac] sm:$0xf] %vm3549_vm2, %v4429_v10  ;;  %v4555_v14 = vpack.c.bf16 %v2178_v11, %v2178_v11 }
 0x13d   : > { %3721 = vst.msk [vmem:[%s5452_s25 + $0x2ac] sm:$0xf] %vm3549_vm2, %v4557_v12  ;;  %3591 = vst.msk [vmem:[%s5452_s25 + $0xa4] sm:$0xf] %vm3549_vm2, %v4427_v13  ;;  %v4819_v15 = vpop.f32.mrb[44].mxu0 }
 0x13e   : > { %3719 = vst.msk [vmem:[%s5452_s25 + $0x2a4] sm:$0xf] %vm3549_vm2, %v4555_v14  ;;  %v1687_v16 = vadd.f32 %v4819_v15, %v5441_v48  ;;  %v4947_v17 = vpop.f32.mrb[44].mxu1  ;;  %v1678_v18 = vpop.f32.mrb[45].mxu0 }
 0x13f   : > { %v2199_v19 = vadd.f32 %v4947_v17, %v5441_v48  ;;  %v1679_v20 = vadd.f32 %v5441_v48, %v1678_v18  ;;  %v2190_v21 = vpop.f32.mrb[45].mxu1  ;;  %v4820_v22 = vpop.f32.mrb[46].mxu0 }
 0x140   : > { %v4432_v23 = vpack.c.bf16 %v1687_v16, %v1687_v16  ;;  %v2191_v24 = vadd.f32 %v5441_v48, %v2190_v21  ;;  %v1690_v25 = vadd.f32 %v4820_v22, %v5441_v48  ;;  %v4948_v26 = vpop.f32.mrb[46].mxu1  ;;  %v1681_v27 = vpop.f32.mrb[47].mxu0 }
 0x141   : > { %v4560_v28 = vpack.c.bf16 %v2199_v19, %v2199_v19  ;;  %v4430_v29 = vpack.c.bf16 %v1679_v20, %v1679_v20  ;;  %v2202_v30 = vadd.f32 %v4948_v26, %v5441_v48  ;;  %v1682_v31 = vadd.f32 %v5441_v48, %v1681_v27  ;;  %v2193_v32 = vpop.f32.mrb[47].mxu1 }
 0x142   : > { %3596 = vst.msk [vmem:[%s5452_s25 + $0xb8] sm:$0xf] %vm3549_vm2, %v4432_v23  ;;  %v4558_v33 = vpack.c.bf16 %v2191_v24, %v2191_v24  ;;  %v4433_v34 = vpack.c.bf16 %v1690_v25, %v1690_v25  ;;  %v2194_v35 = vadd.f32 %v5441_v48, %v2193_v32 }
 0x143   : > { %3724 = vst.msk [vmem:[%s5452_s25 + $0x2b8] sm:$0xf] %vm3549_vm2, %v4560_v28  ;;  %3594 = vst.msk [vmem:[%s5452_s25 + $0xb0] sm:$0xf] %vm3549_vm2, %v4430_v29  ;;  %v4561_v36 = vpack.c.bf16 %v2202_v30, %v2202_v30  ;;  %v4431_v37 = vpack.c.bf16 %v1682_v31, %v1682_v31 }
 0x144   : > { %3722 = vst.msk [vmem:[%s5452_s25 + $0x2b0] sm:$0xf] %vm3549_vm2, %v4558_v33  ;;  %3597 = vst.msk [vmem:[%s5452_s25 + $0xbc] sm:$0xf] %vm3549_vm2, %v4433_v34  ;;  %v4559_v38 = vpack.c.bf16 %v2194_v35, %v2194_v35 }
 0x145   : > { %3725 = vst.msk [vmem:[%s5452_s25 + $0x2bc] sm:$0xf] %vm3549_vm2, %v4561_v36  ;;  %3595 = vst.msk [vmem:[%s5452_s25 + $0xb4] sm:$0xf] %vm3549_vm2, %v4431_v37  ;;  %v4823_v39 = vpop.f32.mrb[48].mxu0 }
 0x146   : > { %3723 = vst.msk [vmem:[%s5452_s25 + $0x2b4] sm:$0xf] %vm3549_vm2, %v4559_v38  ;;  %v1703_v40 = vadd.f32 %v4823_v39, %v5441_v48  ;;  %v4951_v41 = vpop.f32.mrb[48].mxu1  ;;  %v1694_v42 = vpop.f32.mrb[49].mxu0 }
 0x147   : > { %v2215_v43 = vadd.f32 %v4951_v41, %v5441_v48  ;;  %v1695_v44 = vadd.f32 %v5441_v48, %v1694_v42  ;;  %v2206_v45 = vpop.f32.mrb[49].mxu1  ;;  %v4824_v46 = vpop.f32.mrb[50].mxu0 }
 0x148   : > { %v4436_v47 = vpack.c.bf16 %v1703_v40, %v1703_v40  ;;  %v2207_v49 = vadd.f32 %v5441_v48, %v2206_v45  ;;  %v1706_v50 = vadd.f32 %v4824_v46, %v5441_v48  ;;  %v4952_v51 = vpop.f32.mrb[50].mxu1  ;;  %v1697_v52 = vpop.f32.mrb[51].mxu0 }
 0x149   : > { %v4564_v53 = vpack.c.bf16 %v2215_v43, %v2215_v43  ;;  %v4434_v54 = vpack.c.bf16 %v1695_v44, %v1695_v44  ;;  %v2218_v55 = vadd.f32 %v4952_v51, %v5441_v48  ;;  %v1698_v56 = vadd.f32 %v5441_v48, %v1697_v52  ;;  %v2209_v57 = vpop.f32.mrb[51].mxu1 }
 0x14a   : > { %3600 = vst.msk [vmem:[%s5452_s25 + $0xc8] sm:$0xf] %vm3549_vm2, %v4436_v47  ;;  %v4562_v58 = vpack.c.bf16 %v2207_v49, %v2207_v49  ;;  %v4437_v59 = vpack.c.bf16 %v1706_v50, %v1706_v50  ;;  %v2210_v60 = vadd.f32 %v5441_v48, %v2209_v57 }
 0x14b   : > { %3728 = vst.msk [vmem:[%s5452_s25 + $0x2c8] sm:$0xf] %vm3549_vm2, %v4564_v53  ;;  %3598 = vst.msk [vmem:[%s5452_s25 + $0xc0] sm:$0xf] %vm3549_vm2, %v4434_v54  ;;  %v4565_v61 = vpack.c.bf16 %v2218_v55, %v2218_v55  ;;  %v4435_v62 = vpack.c.bf16 %v1698_v56, %v1698_v56 }
 0x14c   : > { %3726 = vst.msk [vmem:[%s5452_s25 + $0x2c0] sm:$0xf] %vm3549_vm2, %v4562_v58  ;;  %3601 = vst.msk [vmem:[%s5452_s25 + $0xcc] sm:$0xf] %vm3549_vm2, %v4437_v59  ;;  %v4563_v63 = vpack.c.bf16 %v2210_v60, %v2210_v60 }
 0x14d   : > { %3729 = vst.msk [vmem:[%s5452_s25 + $0x2cc] sm:$0xf] %vm3549_vm2, %v4565_v61  ;;  %3599 = vst.msk [vmem:[%s5452_s25 + $0xc4] sm:$0xf] %vm3549_vm2, %v4435_v62  ;;  %v4827_v0 = vpop.f32.mrb[52].mxu0 }
 0x14e   : > { %3727 = vst.msk [vmem:[%s5452_s25 + $0x2c4] sm:$0xf] %vm3549_vm2, %v4563_v63  ;;  %v1719_v1 = vadd.f32 %v4827_v0, %v5441_v48  ;;  %v4955_v2 = vpop.f32.mrb[52].mxu1  ;;  %v1710_v3 = vpop.f32.mrb[53].mxu0 }
 0x14f   : > { %v2231_v4 = vadd.f32 %v4955_v2, %v5441_v48  ;;  %v1711_v5 = vadd.f32 %v5441_v48, %v1710_v3  ;;  %v2222_v6 = vpop.f32.mrb[53].mxu1  ;;  %v4828_v7 = vpop.f32.mrb[54].mxu0 }
 0x150   : > { %v4440_v8 = vpack.c.bf16 %v1719_v1, %v1719_v1  ;;  %v2223_v9 = vadd.f32 %v5441_v48, %v2222_v6  ;;  %v1722_v10 = vadd.f32 %v4828_v7, %v5441_v48  ;;  %v4956_v11 = vpop.f32.mrb[54].mxu1  ;;  %v1713_v12 = vpop.f32.mrb[55].mxu0 }
 0x151   : > { %v4568_v13 = vpack.c.bf16 %v2231_v4, %v2231_v4  ;;  %v4438_v14 = vpack.c.bf16 %v1711_v5, %v1711_v5  ;;  %v2234_v15 = vadd.f32 %v4956_v11, %v5441_v48  ;;  %v1714_v16 = vadd.f32 %v5441_v48, %v1713_v12  ;;  %v2225_v17 = vpop.f32.mrb[55].mxu1 }
 0x152   : > { %3604 = vst.msk [vmem:[%s5452_s25 + $0xd8] sm:$0xf] %vm3549_vm2, %v4440_v8  ;;  %v4566_v18 = vpack.c.bf16 %v2223_v9, %v2223_v9  ;;  %v4441_v19 = vpack.c.bf16 %v1722_v10, %v1722_v10  ;;  %v2226_v20 = vadd.f32 %v5441_v48, %v2225_v17 }
 0x153   : > { %3732 = vst.msk [vmem:[%s5452_s25 + $0x2d8] sm:$0xf] %vm3549_vm2, %v4568_v13  ;;  %3602 = vst.msk [vmem:[%s5452_s25 + $0xd0] sm:$0xf] %vm3549_vm2, %v4438_v14  ;;  %v4569_v21 = vpack.c.bf16 %v2234_v15, %v2234_v15  ;;  %v4439_v22 = vpack.c.bf16 %v1714_v16, %v1714_v16 }
 0x154   : > { %3730 = vst.msk [vmem:[%s5452_s25 + $0x2d0] sm:$0xf] %vm3549_vm2, %v4566_v18  ;;  %3605 = vst.msk [vmem:[%s5452_s25 + $0xdc] sm:$0xf] %vm3549_vm2, %v4441_v19  ;;  %v4567_v23 = vpack.c.bf16 %v2226_v20, %v2226_v20 }
 0x155   : > { %3733 = vst.msk [vmem:[%s5452_s25 + $0x2dc] sm:$0xf] %vm3549_vm2, %v4569_v21  ;;  %3603 = vst.msk [vmem:[%s5452_s25 + $0xd4] sm:$0xf] %vm3549_vm2, %v4439_v22  ;;  %v4831_v24 = vpop.f32.mrb[56].mxu0 }
 0x156   : > { %3731 = vst.msk [vmem:[%s5452_s25 + $0x2d4] sm:$0xf] %vm3549_vm2, %v4567_v23  ;;  %v1735_v25 = vadd.f32 %v4831_v24, %v5441_v48  ;;  %v4959_v26 = vpop.f32.mrb[56].mxu1  ;;  %v1726_v27 = vpop.f32.mrb[57].mxu0 }
 0x157   : > { %v2247_v28 = vadd.f32 %v4959_v26, %v5441_v48  ;;  %v1727_v29 = vadd.f32 %v5441_v48, %v1726_v27  ;;  %v2238_v30 = vpop.f32.mrb[57].mxu1  ;;  %v4832_v31 = vpop.f32.mrb[58].mxu0 }
 0x158   : > { %v4444_v32 = vpack.c.bf16 %v1735_v25, %v1735_v25  ;;  %v2239_v33 = vadd.f32 %v5441_v48, %v2238_v30  ;;  %v1738_v34 = vadd.f32 %v4832_v31, %v5441_v48  ;;  %v4960_v35 = vpop.f32.mrb[58].mxu1  ;;  %v1729_v36 = vpop.f32.mrb[59].mxu0 }
 0x159   : > { %v4572_v37 = vpack.c.bf16 %v2247_v28, %v2247_v28  ;;  %v4442_v38 = vpack.c.bf16 %v1727_v29, %v1727_v29  ;;  %v2250_v39 = vadd.f32 %v4960_v35, %v5441_v48  ;;  %v1730_v40 = vadd.f32 %v5441_v48, %v1729_v36  ;;  %v2241_v41 = vpop.f32.mrb[59].mxu1 }
 0x15a   : > { %3608 = vst.msk [vmem:[%s5452_s25 + $0xe8] sm:$0xf] %vm3549_vm2, %v4444_v32  ;;  %v4570_v42 = vpack.c.bf16 %v2239_v33, %v2239_v33  ;;  %v4445_v43 = vpack.c.bf16 %v1738_v34, %v1738_v34  ;;  %v2242_v44 = vadd.f32 %v5441_v48, %v2241_v41  ;;  %v5851_v48 = vld [vmem:[%s6261_s2] ss:$0 sm:$0xff] }
 0x15b   : > { %3736 = vst.msk [vmem:[%s5452_s25 + $0x2e8] sm:$0xf] %vm3549_vm2, %v4572_v37  ;;  %3606 = vst.msk [vmem:[%s5452_s25 + $0xe0] sm:$0xf] %vm3549_vm2, %v4442_v38  ;;  %v4573_v45 = vpack.c.bf16 %v2250_v39, %v2250_v39  ;;  %v4443_v46 = vpack.c.bf16 %v1730_v40, %v1730_v40 }
 0x15c   : > { %3734 = vst.msk [vmem:[%s5452_s25 + $0x2e0] sm:$0xf] %vm3549_vm2, %v4570_v42  ;;  %3609 = vst.msk [vmem:[%s5452_s25 + $0xec] sm:$0xf] %vm3549_vm2, %v4445_v43  ;;  %v4571_v47 = vpack.c.bf16 %v2242_v44, %v2242_v44 }
 0x15d   : > { %3737 = vst.msk [vmem:[%s5452_s25 + $0x2ec] sm:$0xf] %vm3549_vm2, %v4573_v45  ;;  %3607 = vst.msk [vmem:[%s5452_s25 + $0xe4] sm:$0xf] %vm3549_vm2, %v4443_v46  ;;  %v4835_v49 = vpop.f32.mrb[60].mxu0 }
 0x15e   : > { %3735 = vst.msk [vmem:[%s5452_s25 + $0x2e4] sm:$0xf] %vm3549_vm2, %v4571_v47  ;;  %v1751_v50 = vadd.f32 %v5851_v48, %v4835_v49  ;;  %v4963_v51 = vpop.f32.mrb[60].mxu1  ;;  %v1742_v52 = vpop.f32.mrb[61].mxu0 }
 0x15f   : > { %v2263_v53 = vadd.f32 %v5851_v48, %v4963_v51  ;;  %v1743_v54 = vadd.f32 %v5851_v48, %v1742_v52  ;;  %v2254_v55 = vpop.f32.mrb[61].mxu1  ;;  %v4836_v56 = vpop.f32.mrb[62].mxu0 }
 0x160   : > { %v4448_v57 = vpack.c.bf16 %v1751_v50, %v1751_v50  ;;  %v2255_v58 = vadd.f32 %v5851_v48, %v2254_v55  ;;  %v1754_v59 = vadd.f32 %v5851_v48, %v4836_v56  ;;  %v4964_v60 = vpop.f32.mrb[62].mxu1  ;;  %v1745_v61 = vpop.f32.mrb[63].mxu0 }
 0x161   : > { %v4576_v62 = vpack.c.bf16 %v2263_v53, %v2263_v53  ;;  %v4446_v63 = vpack.c.bf16 %v1743_v54, %v1743_v54  ;;  %v2266_v0 = vadd.f32 %v5851_v48, %v4964_v60  ;;  %v1746_v1 = vadd.f32 %v5851_v48, %v1745_v61  ;;  %v2257_v2 = vpop.f32.mrb[63].mxu1 }
 0x162   : > { %3612 = vst.msk [vmem:[%s5452_s25 + $0xf8] sm:$0xf] %vm3549_vm2, %v4448_v57  ;;  %v4574_v3 = vpack.c.bf16 %v2255_v58, %v2255_v58  ;;  %v4449_v4 = vpack.c.bf16 %v1754_v59, %v1754_v59  ;;  %v2258_v5 = vadd.f32 %v5851_v48, %v2257_v2 }
 0x163   : > { %3740 = vst.msk [vmem:[%s5452_s25 + $0x2f8] sm:$0xf] %vm3549_vm2, %v4576_v62  ;;  %3610 = vst.msk [vmem:[%s5452_s25 + $0xf0] sm:$0xf] %vm3549_vm2, %v4446_v63  ;;  %v4577_v6 = vpack.c.bf16 %v2266_v0, %v2266_v0  ;;  %v4447_v7 = vpack.c.bf16 %v1746_v1, %v1746_v1 }
 0x164   : > { %3738 = vst.msk [vmem:[%s5452_s25 + $0x2f0] sm:$0xf] %vm3549_vm2, %v4574_v3  ;;  %3613 = vst.msk [vmem:[%s5452_s25 + $0xfc] sm:$0xf] %vm3549_vm2, %v4449_v4  ;;  %v4575_v8 = vpack.c.bf16 %v2258_v5, %v2258_v5 }
 0x165   : > { %3741 = vst.msk [vmem:[%s5452_s25 + $0x2fc] sm:$0xf] %vm3549_vm2, %v4577_v6  ;;  %3611 = vst.msk [vmem:[%s5452_s25 + $0xf4] sm:$0xf] %vm3549_vm2, %v4447_v7  ;;  %v4839_v9 = vpop.f32.mrb[64].mxu0 }
 0x166   : > { %3739 = vst.msk [vmem:[%s5452_s25 + $0x2f4] sm:$0xf] %vm3549_vm2, %v4575_v8  ;;  %v1767_v10 = vadd.f32 %v5851_v48, %v4839_v9  ;;  %v4967_v11 = vpop.f32.mrb[64].mxu1  ;;  %v1758_v12 = vpop.f32.mrb[65].mxu0 }
 0x167   : > { %v2279_v13 = vadd.f32 %v5851_v48, %v4967_v11  ;;  %v1759_v14 = vadd.f32 %v5851_v48, %v1758_v12  ;;  %v2270_v15 = vpop.f32.mrb[65].mxu1  ;;  %v4840_v16 = vpop.f32.mrb[66].mxu0 }
 0x168   : > { %v4452_v17 = vpack.c.bf16 %v1767_v10, %v1767_v10  ;;  %v2271_v18 = vadd.f32 %v5851_v48, %v2270_v15  ;;  %v1770_v19 = vadd.f32 %v5851_v48, %v4840_v16  ;;  %v4968_v20 = vpop.f32.mrb[66].mxu1  ;;  %v1761_v21 = vpop.f32.mrb[67].mxu0 }
 0x169   : > { %v4580_v22 = vpack.c.bf16 %v2279_v13, %v2279_v13  ;;  %v4450_v23 = vpack.c.bf16 %v1759_v14, %v1759_v14  ;;  %v2282_v24 = vadd.f32 %v5851_v48, %v4968_v20  ;;  %v1762_v25 = vadd.f32 %v5851_v48, %v1761_v21  ;;  %v2273_v26 = vpop.f32.mrb[67].mxu1 }
 0x16a   : > { %3616 = vst.msk [vmem:[%s5452_s25 + $0x108] sm:$0xf] %vm3549_vm2, %v4452_v17  ;;  %v4578_v27 = vpack.c.bf16 %v2271_v18, %v2271_v18  ;;  %v4453_v28 = vpack.c.bf16 %v1770_v19, %v1770_v19  ;;  %v2274_v29 = vadd.f32 %v5851_v48, %v2273_v26 }
 0x16b   : > { %3744 = vst.msk [vmem:[%s5452_s25 + $0x308] sm:$0xf] %vm3549_vm2, %v4580_v22  ;;  %3614 = vst.msk [vmem:[%s5452_s25 + $0x100] sm:$0xf] %vm3549_vm2, %v4450_v23  ;;  %v4581_v30 = vpack.c.bf16 %v2282_v24, %v2282_v24  ;;  %v4451_v31 = vpack.c.bf16 %v1762_v25, %v1762_v25 }
 0x16c   : > { %3742 = vst.msk [vmem:[%s5452_s25 + $0x300] sm:$0xf] %vm3549_vm2, %v4578_v27  ;;  %3617 = vst.msk [vmem:[%s5452_s25 + $0x10c] sm:$0xf] %vm3549_vm2, %v4453_v28  ;;  %v4579_v32 = vpack.c.bf16 %v2274_v29, %v2274_v29 }
 0x16d   : > { %3745 = vst.msk [vmem:[%s5452_s25 + $0x30c] sm:$0xf] %vm3549_vm2, %v4581_v30  ;;  %3615 = vst.msk [vmem:[%s5452_s25 + $0x104] sm:$0xf] %vm3549_vm2, %v4451_v31  ;;  %v4843_v33 = vpop.f32.mrb[68].mxu0 }
 0x16e   : > { %3743 = vst.msk [vmem:[%s5452_s25 + $0x304] sm:$0xf] %vm3549_vm2, %v4579_v32  ;;  %v1783_v34 = vadd.f32 %v5851_v48, %v4843_v33  ;;  %v4971_v35 = vpop.f32.mrb[68].mxu1  ;;  %v1774_v36 = vpop.f32.mrb[69].mxu0 }
 0x16f   : > { %v2295_v37 = vadd.f32 %v5851_v48, %v4971_v35  ;;  %v1775_v38 = vadd.f32 %v5851_v48, %v1774_v36  ;;  %v2286_v39 = vpop.f32.mrb[69].mxu1  ;;  %v4844_v40 = vpop.f32.mrb[70].mxu0 }
 0x170   : > { %v4456_v41 = vpack.c.bf16 %v1783_v34, %v1783_v34  ;;  %v2287_v42 = vadd.f32 %v5851_v48, %v2286_v39  ;;  %v1786_v43 = vadd.f32 %v5851_v48, %v4844_v40  ;;  %v4972_v44 = vpop.f32.mrb[70].mxu1  ;;  %v1777_v45 = vpop.f32.mrb[71].mxu0 }
 0x171   : > { %v4584_v46 = vpack.c.bf16 %v2295_v37, %v2295_v37  ;;  %v4454_v47 = vpack.c.bf16 %v1775_v38, %v1775_v38  ;;  %v2298_v49 = vadd.f32 %v5851_v48, %v4972_v44  ;;  %v1778_v50 = vadd.f32 %v5851_v48, %v1777_v45  ;;  %v2289_v51 = vpop.f32.mrb[71].mxu1 }
 0x172   : > { %3620 = vst.msk [vmem:[%s5452_s25 + $0x118] sm:$0xf] %vm3549_vm2, %v4456_v41  ;;  %v4582_v52 = vpack.c.bf16 %v2287_v42, %v2287_v42  ;;  %v4457_v53 = vpack.c.bf16 %v1786_v43, %v1786_v43  ;;  %v2290_v54 = vadd.f32 %v5851_v48, %v2289_v51 }
 0x173   : > { %3748 = vst.msk [vmem:[%s5452_s25 + $0x318] sm:$0xf] %vm3549_vm2, %v4584_v46  ;;  %3618 = vst.msk [vmem:[%s5452_s25 + $0x110] sm:$0xf] %vm3549_vm2, %v4454_v47  ;;  %v4585_v55 = vpack.c.bf16 %v2298_v49, %v2298_v49  ;;  %v4455_v56 = vpack.c.bf16 %v1778_v50, %v1778_v50 }
 0x174   : > { %3746 = vst.msk [vmem:[%s5452_s25 + $0x310] sm:$0xf] %vm3549_vm2, %v4582_v52  ;;  %3621 = vst.msk [vmem:[%s5452_s25 + $0x11c] sm:$0xf] %vm3549_vm2, %v4457_v53  ;;  %v4583_v57 = vpack.c.bf16 %v2290_v54, %v2290_v54 }
 0x175   : > { %3749 = vst.msk [vmem:[%s5452_s25 + $0x31c] sm:$0xf] %vm3549_vm2, %v4585_v55  ;;  %3619 = vst.msk [vmem:[%s5452_s25 + $0x114] sm:$0xf] %vm3549_vm2, %v4455_v56  ;;  %v4847_v58 = vpop.f32.mrb[72].mxu0 }
 0x176   : > { %3747 = vst.msk [vmem:[%s5452_s25 + $0x314] sm:$0xf] %vm3549_vm2, %v4583_v57  ;;  %v1799_v59 = vadd.f32 %v5851_v48, %v4847_v58  ;;  %v4975_v60 = vpop.f32.mrb[72].mxu1  ;;  %v1790_v61 = vpop.f32.mrb[73].mxu0 }
 0x177   : > { %v2311_v62 = vadd.f32 %v5851_v48, %v4975_v60  ;;  %v1791_v63 = vadd.f32 %v5851_v48, %v1790_v61  ;;  %v2302_v0 = vpop.f32.mrb[73].mxu1  ;;  %v4848_v1 = vpop.f32.mrb[74].mxu0 }
 0x178   : > { %v4460_v2 = vpack.c.bf16 %v1799_v59, %v1799_v59  ;;  %v2303_v3 = vadd.f32 %v5851_v48, %v2302_v0  ;;  %v1802_v4 = vadd.f32 %v5851_v48, %v4848_v1  ;;  %v4976_v5 = vpop.f32.mrb[74].mxu1  ;;  %v1793_v6 = vpop.f32.mrb[75].mxu0 }
 0x179   : > { %v4588_v7 = vpack.c.bf16 %v2311_v62, %v2311_v62  ;;  %v4458_v8 = vpack.c.bf16 %v1791_v63, %v1791_v63  ;;  %v2314_v9 = vadd.f32 %v5851_v48, %v4976_v5  ;;  %v1794_v10 = vadd.f32 %v5851_v48, %v1793_v6  ;;  %v2305_v11 = vpop.f32.mrb[75].mxu1 }
 0x17a   : > { %3624 = vst.msk [vmem:[%s5452_s25 + $0x128] sm:$0xf] %vm3549_vm2, %v4460_v2  ;;  %v4586_v12 = vpack.c.bf16 %v2303_v3, %v2303_v3  ;;  %v4461_v13 = vpack.c.bf16 %v1802_v4, %v1802_v4  ;;  %v2306_v14 = vadd.f32 %v5851_v48, %v2305_v11 }
 0x17b   : > { %3752 = vst.msk [vmem:[%s5452_s25 + $0x328] sm:$0xf] %vm3549_vm2, %v4588_v7  ;;  %3622 = vst.msk [vmem:[%s5452_s25 + $0x120] sm:$0xf] %vm3549_vm2, %v4458_v8  ;;  %v4589_v15 = vpack.c.bf16 %v2314_v9, %v2314_v9  ;;  %v4459_v16 = vpack.c.bf16 %v1794_v10, %v1794_v10 }
 0x17c   : > { %3750 = vst.msk [vmem:[%s5452_s25 + $0x320] sm:$0xf] %vm3549_vm2, %v4586_v12  ;;  %3625 = vst.msk [vmem:[%s5452_s25 + $0x12c] sm:$0xf] %vm3549_vm2, %v4461_v13  ;;  %v4587_v17 = vpack.c.bf16 %v2306_v14, %v2306_v14 }
 0x17d   : > { %3753 = vst.msk [vmem:[%s5452_s25 + $0x32c] sm:$0xf] %vm3549_vm2, %v4589_v15  ;;  %3623 = vst.msk [vmem:[%s5452_s25 + $0x124] sm:$0xf] %vm3549_vm2, %v4459_v16  ;;  %v4851_v18 = vpop.f32.mrb[76].mxu0 }
 0x17e   : > { %3751 = vst.msk [vmem:[%s5452_s25 + $0x324] sm:$0xf] %vm3549_vm2, %v4587_v17  ;;  %v1815_v19 = vadd.f32 %v5851_v48, %v4851_v18  ;;  %v4979_v20 = vpop.f32.mrb[76].mxu1  ;;  %v1806_v21 = vpop.f32.mrb[77].mxu0 }
 0x17f   : > { %v2327_v22 = vadd.f32 %v5851_v48, %v4979_v20  ;;  %v1807_v23 = vadd.f32 %v5851_v48, %v1806_v21  ;;  %v2318_v24 = vpop.f32.mrb[77].mxu1  ;;  %v4852_v25 = vpop.f32.mrb[78].mxu0 }
 0x180   : > { %v4464_v26 = vpack.c.bf16 %v1815_v19, %v1815_v19  ;;  %v2319_v27 = vadd.f32 %v5851_v48, %v2318_v24  ;;  %v1818_v28 = vadd.f32 %v5851_v48, %v4852_v25  ;;  %v4980_v29 = vpop.f32.mrb[78].mxu1  ;;  %v1809_v30 = vpop.f32.mrb[79].mxu0 }
 0x181   : > { %v4592_v31 = vpack.c.bf16 %v2327_v22, %v2327_v22  ;;  %v4462_v32 = vpack.c.bf16 %v1807_v23, %v1807_v23  ;;  %v2330_v33 = vadd.f32 %v5851_v48, %v4980_v29  ;;  %v1810_v34 = vadd.f32 %v5851_v48, %v1809_v30  ;;  %v2321_v35 = vpop.f32.mrb[79].mxu1 }
 0x182   : > { %3628 = vst.msk [vmem:[%s5452_s25 + $0x138] sm:$0xf] %vm3549_vm2, %v4464_v26  ;;  %v4590_v36 = vpack.c.bf16 %v2319_v27, %v2319_v27  ;;  %v4465_v37 = vpack.c.bf16 %v1818_v28, %v1818_v28  ;;  %v2322_v38 = vadd.f32 %v5851_v48, %v2321_v35 }
 0x183   : > { %3756 = vst.msk [vmem:[%s5452_s25 + $0x338] sm:$0xf] %vm3549_vm2, %v4592_v31  ;;  %3626 = vst.msk [vmem:[%s5452_s25 + $0x130] sm:$0xf] %vm3549_vm2, %v4462_v32  ;;  %v4593_v39 = vpack.c.bf16 %v2330_v33, %v2330_v33  ;;  %v4463_v40 = vpack.c.bf16 %v1810_v34, %v1810_v34 }
 0x184   : > { %3754 = vst.msk [vmem:[%s5452_s25 + $0x330] sm:$0xf] %vm3549_vm2, %v4590_v36  ;;  %3629 = vst.msk [vmem:[%s5452_s25 + $0x13c] sm:$0xf] %vm3549_vm2, %v4465_v37  ;;  %v4591_v41 = vpack.c.bf16 %v2322_v38, %v2322_v38 }
 0x185   : > { %3757 = vst.msk [vmem:[%s5452_s25 + $0x33c] sm:$0xf] %vm3549_vm2, %v4593_v39  ;;  %3627 = vst.msk [vmem:[%s5452_s25 + $0x134] sm:$0xf] %vm3549_vm2, %v4463_v40  ;;  %v4855_v42 = vpop.f32.mrb[80].mxu0 }
 0x186   : > { %3755 = vst.msk [vmem:[%s5452_s25 + $0x334] sm:$0xf] %vm3549_vm2, %v4591_v41  ;;  %v1831_v43 = vadd.f32 %v5851_v48, %v4855_v42  ;;  %v4983_v44 = vpop.f32.mrb[80].mxu1  ;;  %v1822_v45 = vpop.f32.mrb[81].mxu0 }
 0x187   : > { %v2343_v46 = vadd.f32 %v5851_v48, %v4983_v44  ;;  %v1823_v47 = vadd.f32 %v5851_v48, %v1822_v45  ;;  %v2334_v49 = vpop.f32.mrb[81].mxu1  ;;  %v4856_v50 = vpop.f32.mrb[82].mxu0 }
 0x188   : > { %v4468_v51 = vpack.c.bf16 %v1831_v43, %v1831_v43  ;;  %v2335_v52 = vadd.f32 %v5851_v48, %v2334_v49  ;;  %v1834_v53 = vadd.f32 %v5851_v48, %v4856_v50  ;;  %v4984_v54 = vpop.f32.mrb[82].mxu1  ;;  %v1825_v55 = vpop.f32.mrb[83].mxu0 }
 0x189   : > { %v4596_v56 = vpack.c.bf16 %v2343_v46, %v2343_v46  ;;  %v4466_v57 = vpack.c.bf16 %v1823_v47, %v1823_v47  ;;  %v2346_v58 = vadd.f32 %v5851_v48, %v4984_v54  ;;  %v1826_v59 = vadd.f32 %v5851_v48, %v1825_v55  ;;  %v2337_v60 = vpop.f32.mrb[83].mxu1 }
 0x18a   : > { %3632 = vst.msk [vmem:[%s5452_s25 + $0x148] sm:$0xf] %vm3549_vm2, %v4468_v51  ;;  %v4594_v61 = vpack.c.bf16 %v2335_v52, %v2335_v52  ;;  %v4469_v62 = vpack.c.bf16 %v1834_v53, %v1834_v53  ;;  %v2338_v63 = vadd.f32 %v5851_v48, %v2337_v60 }
 0x18b   : > { %3760 = vst.msk [vmem:[%s5452_s25 + $0x348] sm:$0xf] %vm3549_vm2, %v4596_v56  ;;  %3630 = vst.msk [vmem:[%s5452_s25 + $0x140] sm:$0xf] %vm3549_vm2, %v4466_v57  ;;  %v4597_v0 = vpack.c.bf16 %v2346_v58, %v2346_v58  ;;  %v4467_v1 = vpack.c.bf16 %v1826_v59, %v1826_v59 }
 0x18c   : > { %3758 = vst.msk [vmem:[%s5452_s25 + $0x340] sm:$0xf] %vm3549_vm2, %v4594_v61  ;;  %3633 = vst.msk [vmem:[%s5452_s25 + $0x14c] sm:$0xf] %vm3549_vm2, %v4469_v62  ;;  %v4595_v2 = vpack.c.bf16 %v2338_v63, %v2338_v63 }
 0x18d   : > { %3761 = vst.msk [vmem:[%s5452_s25 + $0x34c] sm:$0xf] %vm3549_vm2, %v4597_v0  ;;  %3631 = vst.msk [vmem:[%s5452_s25 + $0x144] sm:$0xf] %vm3549_vm2, %v4467_v1  ;;  %v4859_v3 = vpop.f32.mrb[84].mxu0 }
 0x18e   : > { %3759 = vst.msk [vmem:[%s5452_s25 + $0x344] sm:$0xf] %vm3549_vm2, %v4595_v2  ;;  %v1847_v4 = vadd.f32 %v5851_v48, %v4859_v3  ;;  %v4987_v5 = vpop.f32.mrb[84].mxu1  ;;  %v1838_v6 = vpop.f32.mrb[85].mxu0 }
 0x18f   : > { %v2359_v7 = vadd.f32 %v5851_v48, %v4987_v5  ;;  %v1839_v8 = vadd.f32 %v5851_v48, %v1838_v6  ;;  %v2350_v9 = vpop.f32.mrb[85].mxu1  ;;  %v4860_v10 = vpop.f32.mrb[86].mxu0 }
 0x190   : > { %v4472_v11 = vpack.c.bf16 %v1847_v4, %v1847_v4  ;;  %v2351_v12 = vadd.f32 %v5851_v48, %v2350_v9  ;;  %v1850_v13 = vadd.f32 %v5851_v48, %v4860_v10  ;;  %v4988_v14 = vpop.f32.mrb[86].mxu1  ;;  %v1841_v15 = vpop.f32.mrb[87].mxu0 }
 0x191   : > { %v4600_v16 = vpack.c.bf16 %v2359_v7, %v2359_v7  ;;  %v4470_v17 = vpack.c.bf16 %v1839_v8, %v1839_v8  ;;  %v2362_v18 = vadd.f32 %v5851_v48, %v4988_v14  ;;  %v1842_v19 = vadd.f32 %v5851_v48, %v1841_v15  ;;  %v2353_v20 = vpop.f32.mrb[87].mxu1 }
 0x192   : > { %3636 = vst.msk [vmem:[%s5452_s25 + $0x158] sm:$0xf] %vm3549_vm2, %v4472_v11  ;;  %v4598_v21 = vpack.c.bf16 %v2351_v12, %v2351_v12  ;;  %v4473_v22 = vpack.c.bf16 %v1850_v13, %v1850_v13  ;;  %v2354_v23 = vadd.f32 %v5851_v48, %v2353_v20 }
 0x193   : > { %3764 = vst.msk [vmem:[%s5452_s25 + $0x358] sm:$0xf] %vm3549_vm2, %v4600_v16  ;;  %3634 = vst.msk [vmem:[%s5452_s25 + $0x150] sm:$0xf] %vm3549_vm2, %v4470_v17  ;;  %v4601_v24 = vpack.c.bf16 %v2362_v18, %v2362_v18  ;;  %v4471_v25 = vpack.c.bf16 %v1842_v19, %v1842_v19 }
 0x194   : > { %3762 = vst.msk [vmem:[%s5452_s25 + $0x350] sm:$0xf] %vm3549_vm2, %v4598_v21  ;;  %3637 = vst.msk [vmem:[%s5452_s25 + $0x15c] sm:$0xf] %vm3549_vm2, %v4473_v22  ;;  %v4599_v26 = vpack.c.bf16 %v2354_v23, %v2354_v23 }
 0x195   : > { %3765 = vst.msk [vmem:[%s5452_s25 + $0x35c] sm:$0xf] %vm3549_vm2, %v4601_v24  ;;  %3635 = vst.msk [vmem:[%s5452_s25 + $0x154] sm:$0xf] %vm3549_vm2, %v4471_v25  ;;  %v4863_v27 = vpop.f32.mrb[88].mxu0 }
 0x196   : > { %3763 = vst.msk [vmem:[%s5452_s25 + $0x354] sm:$0xf] %vm3549_vm2, %v4599_v26  ;;  %v1863_v28 = vadd.f32 %v5851_v48, %v4863_v27  ;;  %v4991_v29 = vpop.f32.mrb[88].mxu1  ;;  %v1854_v30 = vpop.f32.mrb[89].mxu0 }
 0x197   : > { %v2375_v31 = vadd.f32 %v5851_v48, %v4991_v29  ;;  %v1855_v32 = vadd.f32 %v5851_v48, %v1854_v30  ;;  %v2366_v33 = vpop.f32.mrb[89].mxu1  ;;  %v4864_v34 = vpop.f32.mrb[90].mxu0 }
 0x198   : > { %v4476_v35 = vpack.c.bf16 %v1863_v28, %v1863_v28  ;;  %v2367_v36 = vadd.f32 %v5851_v48, %v2366_v33  ;;  %v1866_v37 = vadd.f32 %v5851_v48, %v4864_v34  ;;  %v4992_v38 = vpop.f32.mrb[90].mxu1  ;;  %v1857_v39 = vpop.f32.mrb[91].mxu0 }
 0x199   : > { %v4604_v40 = vpack.c.bf16 %v2375_v31, %v2375_v31  ;;  %v4474_v41 = vpack.c.bf16 %v1855_v32, %v1855_v32  ;;  %v2378_v42 = vadd.f32 %v5851_v48, %v4992_v38  ;;  %v1858_v43 = vadd.f32 %v5851_v48, %v1857_v39  ;;  %v2369_v44 = vpop.f32.mrb[91].mxu1 }
 0x19a   : > { %3640 = vst.msk [vmem:[%s5452_s25 + $0x168] sm:$0xf] %vm3549_vm2, %v4476_v35  ;;  %v4602_v45 = vpack.c.bf16 %v2367_v36, %v2367_v36  ;;  %v4477_v46 = vpack.c.bf16 %v1866_v37, %v1866_v37  ;;  %v2370_v47 = vadd.f32 %v5851_v48, %v2369_v44 }
 0x19b   : > { %3768 = vst.msk [vmem:[%s5452_s25 + $0x368] sm:$0xf] %vm3549_vm2, %v4604_v40  ;;  %3638 = vst.msk [vmem:[%s5452_s25 + $0x160] sm:$0xf] %vm3549_vm2, %v4474_v41  ;;  %v4605_v49 = vpack.c.bf16 %v2378_v42, %v2378_v42  ;;  %v4475_v50 = vpack.c.bf16 %v1858_v43, %v1858_v43 }
 0x19c   : > { %3766 = vst.msk [vmem:[%s5452_s25 + $0x360] sm:$0xf] %vm3549_vm2, %v4602_v45  ;;  %3641 = vst.msk [vmem:[%s5452_s25 + $0x16c] sm:$0xf] %vm3549_vm2, %v4477_v46  ;;  %v4603_v51 = vpack.c.bf16 %v2370_v47, %v2370_v47 }
 0x19d   : > { %3769 = vst.msk [vmem:[%s5452_s25 + $0x36c] sm:$0xf] %vm3549_vm2, %v4605_v49  ;;  %3639 = vst.msk [vmem:[%s5452_s25 + $0x164] sm:$0xf] %vm3549_vm2, %v4475_v50  ;;  %v4867_v52 = vpop.f32.mrb[92].mxu0 }
 0x19e   : > { %3767 = vst.msk [vmem:[%s5452_s25 + $0x364] sm:$0xf] %vm3549_vm2, %v4603_v51  ;;  %v1879_v53 = vadd.f32 %v5851_v48, %v4867_v52  ;;  %v4995_v54 = vpop.f32.mrb[92].mxu1  ;;  %v1870_v55 = vpop.f32.mrb[93].mxu0 }
 0x19f   : > { %v2391_v56 = vadd.f32 %v5851_v48, %v4995_v54  ;;  %v1871_v57 = vadd.f32 %v5851_v48, %v1870_v55  ;;  %v2382_v58 = vpop.f32.mrb[93].mxu1  ;;  %v4868_v59 = vpop.f32.mrb[94].mxu0 }
 0x1a0   : > { %v4480_v60 = vpack.c.bf16 %v1879_v53, %v1879_v53  ;;  %v2383_v61 = vadd.f32 %v5851_v48, %v2382_v58  ;;  %v1882_v62 = vadd.f32 %v5851_v48, %v4868_v59  ;;  %v4996_v63 = vpop.f32.mrb[94].mxu1  ;;  %v1873_v0 = vpop.f32.mrb[95].mxu0 }
 0x1a1   : > { %v4608_v1 = vpack.c.bf16 %v2391_v56, %v2391_v56  ;;  %v4478_v2 = vpack.c.bf16 %v1871_v57, %v1871_v57  ;;  %v2394_v3 = vadd.f32 %v5851_v48, %v4996_v63  ;;  %v1874_v4 = vadd.f32 %v5851_v48, %v1873_v0  ;;  %v2385_v5 = vpop.f32.mrb[95].mxu1 }
 0x1a2   : > { %3644 = vst.msk [vmem:[%s5452_s25 + $0x178] sm:$0xf] %vm3549_vm2, %v4480_v60  ;;  %v4606_v6 = vpack.c.bf16 %v2383_v61, %v2383_v61  ;;  %v4481_v7 = vpack.c.bf16 %v1882_v62, %v1882_v62  ;;  %v2386_v8 = vadd.f32 %v5851_v48, %v2385_v5 }
 0x1a3   : > { %3772 = vst.msk [vmem:[%s5452_s25 + $0x378] sm:$0xf] %vm3549_vm2, %v4608_v1  ;;  %3642 = vst.msk [vmem:[%s5452_s25 + $0x170] sm:$0xf] %vm3549_vm2, %v4478_v2  ;;  %v4609_v9 = vpack.c.bf16 %v2394_v3, %v2394_v3  ;;  %v4479_v10 = vpack.c.bf16 %v1874_v4, %v1874_v4 }
 0x1a4   : > { %3770 = vst.msk [vmem:[%s5452_s25 + $0x370] sm:$0xf] %vm3549_vm2, %v4606_v6  ;;  %3645 = vst.msk [vmem:[%s5452_s25 + $0x17c] sm:$0xf] %vm3549_vm2, %v4481_v7  ;;  %v4607_v11 = vpack.c.bf16 %v2386_v8, %v2386_v8 }
 0x1a5   : > { %3773 = vst.msk [vmem:[%s5452_s25 + $0x37c] sm:$0xf] %vm3549_vm2, %v4609_v9  ;;  %3643 = vst.msk [vmem:[%s5452_s25 + $0x174] sm:$0xf] %vm3549_vm2, %v4479_v10  ;;  %v4871_v12 = vpop.f32.mrb[96].mxu0 }
 0x1a6   : > { %3771 = vst.msk [vmem:[%s5452_s25 + $0x374] sm:$0xf] %vm3549_vm2, %v4607_v11  ;;  %v1895_v13 = vadd.f32 %v5851_v48, %v4871_v12  ;;  %v4999_v14 = vpop.f32.mrb[96].mxu1  ;;  %v1886_v15 = vpop.f32.mrb[97].mxu0 }
 0x1a7   : > { %v2407_v16 = vadd.f32 %v5851_v48, %v4999_v14  ;;  %v1887_v17 = vadd.f32 %v5851_v48, %v1886_v15  ;;  %v2398_v18 = vpop.f32.mrb[97].mxu1  ;;  %v4872_v19 = vpop.f32.mrb[98].mxu0 }
 0x1a8   : > { %v4484_v20 = vpack.c.bf16 %v1895_v13, %v1895_v13  ;;  %v2399_v21 = vadd.f32 %v5851_v48, %v2398_v18  ;;  %v1898_v22 = vadd.f32 %v5851_v48, %v4872_v19  ;;  %v5000_v23 = vpop.f32.mrb[98].mxu1  ;;  %v1889_v24 = vpop.f32.mrb[99].mxu0 }
 0x1a9   : > { %v4612_v25 = vpack.c.bf16 %v2407_v16, %v2407_v16  ;;  %v4482_v26 = vpack.c.bf16 %v1887_v17, %v1887_v17  ;;  %v2410_v27 = vadd.f32 %v5851_v48, %v5000_v23  ;;  %v1890_v28 = vadd.f32 %v5851_v48, %v1889_v24  ;;  %v2401_v29 = vpop.f32.mrb[99].mxu1 }
 0x1aa   : > { %3648 = vst.msk [vmem:[%s5452_s25 + $0x188] sm:$0xf] %vm3549_vm2, %v4484_v20  ;;  %v4610_v30 = vpack.c.bf16 %v2399_v21, %v2399_v21  ;;  %v4485_v31 = vpack.c.bf16 %v1898_v22, %v1898_v22  ;;  %v2402_v32 = vadd.f32 %v5851_v48, %v2401_v29 }
 0x1ab   : > { %3776 = vst.msk [vmem:[%s5452_s25 + $0x388] sm:$0xf] %vm3549_vm2, %v4612_v25  ;;  %3646 = vst.msk [vmem:[%s5452_s25 + $0x180] sm:$0xf] %vm3549_vm2, %v4482_v26  ;;  %v4613_v33 = vpack.c.bf16 %v2410_v27, %v2410_v27  ;;  %v4483_v34 = vpack.c.bf16 %v1890_v28, %v1890_v28 }
 0x1ac   : > { %3774 = vst.msk [vmem:[%s5452_s25 + $0x380] sm:$0xf] %vm3549_vm2, %v4610_v30  ;;  %3649 = vst.msk [vmem:[%s5452_s25 + $0x18c] sm:$0xf] %vm3549_vm2, %v4485_v31  ;;  %v4611_v35 = vpack.c.bf16 %v2402_v32, %v2402_v32 }
 0x1ad   : > { %3777 = vst.msk [vmem:[%s5452_s25 + $0x38c] sm:$0xf] %vm3549_vm2, %v4613_v33  ;;  %3647 = vst.msk [vmem:[%s5452_s25 + $0x184] sm:$0xf] %vm3549_vm2, %v4483_v34  ;;  %v4875_v36 = vpop.f32.mrb[100].mxu0 }
 0x1ae   : > { %3775 = vst.msk [vmem:[%s5452_s25 + $0x384] sm:$0xf] %vm3549_vm2, %v4611_v35  ;;  %v1911_v37 = vadd.f32 %v5851_v48, %v4875_v36  ;;  %v5003_v38 = vpop.f32.mrb[100].mxu1  ;;  %v1902_v39 = vpop.f32.mrb[101].mxu0 }
 0x1af   : > { %v2423_v40 = vadd.f32 %v5851_v48, %v5003_v38  ;;  %v1903_v41 = vadd.f32 %v5851_v48, %v1902_v39  ;;  %v2414_v42 = vpop.f32.mrb[101].mxu1  ;;  %v4876_v43 = vpop.f32.mrb[102].mxu0 }
 0x1b0   : > { %v4488_v44 = vpack.c.bf16 %v1911_v37, %v1911_v37  ;;  %v2415_v45 = vadd.f32 %v5851_v48, %v2414_v42  ;;  %v1914_v46 = vadd.f32 %v5851_v48, %v4876_v43  ;;  %v5004_v47 = vpop.f32.mrb[102].mxu1  ;;  %v1905_v49 = vpop.f32.mrb[103].mxu0 }
 0x1b1   : > { %v4616_v50 = vpack.c.bf16 %v2423_v40, %v2423_v40  ;;  %v4486_v51 = vpack.c.bf16 %v1903_v41, %v1903_v41  ;;  %v2426_v52 = vadd.f32 %v5851_v48, %v5004_v47  ;;  %v1906_v53 = vadd.f32 %v5851_v48, %v1905_v49  ;;  %v2417_v54 = vpop.f32.mrb[103].mxu1 }
 0x1b2   : > { %3652 = vst.msk [vmem:[%s5452_s25 + $0x198] sm:$0xf] %vm3549_vm2, %v4488_v44  ;;  %v4614_v55 = vpack.c.bf16 %v2415_v45, %v2415_v45  ;;  %v4489_v56 = vpack.c.bf16 %v1914_v46, %v1914_v46  ;;  %v2418_v57 = vadd.f32 %v5851_v48, %v2417_v54 }
 0x1b3   : > { %3780 = vst.msk [vmem:[%s5452_s25 + $0x398] sm:$0xf] %vm3549_vm2, %v4616_v50  ;;  %3650 = vst.msk [vmem:[%s5452_s25 + $0x190] sm:$0xf] %vm3549_vm2, %v4486_v51  ;;  %v4617_v58 = vpack.c.bf16 %v2426_v52, %v2426_v52  ;;  %v4487_v59 = vpack.c.bf16 %v1906_v53, %v1906_v53 }
 0x1b4   : > { %3778 = vst.msk [vmem:[%s5452_s25 + $0x390] sm:$0xf] %vm3549_vm2, %v4614_v55  ;;  %3653 = vst.msk [vmem:[%s5452_s25 + $0x19c] sm:$0xf] %vm3549_vm2, %v4489_v56  ;;  %v4615_v60 = vpack.c.bf16 %v2418_v57, %v2418_v57 }
 0x1b5   : > { %3781 = vst.msk [vmem:[%s5452_s25 + $0x39c] sm:$0xf] %vm3549_vm2, %v4617_v58  ;;  %3651 = vst.msk [vmem:[%s5452_s25 + $0x194] sm:$0xf] %vm3549_vm2, %v4487_v59  ;;  %v4879_v61 = vpop.f32.mrb[104].mxu0 }
 0x1b6   : > { %3779 = vst.msk [vmem:[%s5452_s25 + $0x394] sm:$0xf] %vm3549_vm2, %v4615_v60  ;;  %v1927_v62 = vadd.f32 %v5851_v48, %v4879_v61  ;;  %v5007_v63 = vpop.f32.mrb[104].mxu1  ;;  %v1918_v0 = vpop.f32.mrb[105].mxu0 }
 0x1b7   : > { %v2439_v1 = vadd.f32 %v5851_v48, %v5007_v63  ;;  %v1919_v2 = vadd.f32 %v5851_v48, %v1918_v0  ;;  %v2430_v3 = vpop.f32.mrb[105].mxu1  ;;  %v4880_v4 = vpop.f32.mrb[106].mxu0 }
 0x1b8   : > { %v4492_v5 = vpack.c.bf16 %v1927_v62, %v1927_v62  ;;  %v2431_v6 = vadd.f32 %v5851_v48, %v2430_v3  ;;  %v1930_v7 = vadd.f32 %v5851_v48, %v4880_v4  ;;  %v5008_v8 = vpop.f32.mrb[106].mxu1  ;;  %v1921_v9 = vpop.f32.mrb[107].mxu0 }
 0x1b9   : > { %v4620_v10 = vpack.c.bf16 %v2439_v1, %v2439_v1  ;;  %v4490_v11 = vpack.c.bf16 %v1919_v2, %v1919_v2  ;;  %v2442_v12 = vadd.f32 %v5851_v48, %v5008_v8  ;;  %v1922_v13 = vadd.f32 %v5851_v48, %v1921_v9  ;;  %v2433_v14 = vpop.f32.mrb[107].mxu1 }
 0x1ba   : > { %3656 = vst.msk [vmem:[%s5452_s25 + $0x1a8] sm:$0xf] %vm3549_vm2, %v4492_v5  ;;  %v4618_v15 = vpack.c.bf16 %v2431_v6, %v2431_v6  ;;  %v4493_v16 = vpack.c.bf16 %v1930_v7, %v1930_v7  ;;  %v2434_v17 = vadd.f32 %v5851_v48, %v2433_v14 }
 0x1bb   : > { %3784 = vst.msk [vmem:[%s5452_s25 + $0x3a8] sm:$0xf] %vm3549_vm2, %v4620_v10  ;;  %3654 = vst.msk [vmem:[%s5452_s25 + $0x1a0] sm:$0xf] %vm3549_vm2, %v4490_v11  ;;  %v4621_v18 = vpack.c.bf16 %v2442_v12, %v2442_v12  ;;  %v4491_v19 = vpack.c.bf16 %v1922_v13, %v1922_v13 }
 0x1bc   : > { %3782 = vst.msk [vmem:[%s5452_s25 + $0x3a0] sm:$0xf] %vm3549_vm2, %v4618_v15  ;;  %3657 = vst.msk [vmem:[%s5452_s25 + $0x1ac] sm:$0xf] %vm3549_vm2, %v4493_v16  ;;  %v4619_v20 = vpack.c.bf16 %v2434_v17, %v2434_v17 }
 0x1bd   : > { %3785 = vst.msk [vmem:[%s5452_s25 + $0x3ac] sm:$0xf] %vm3549_vm2, %v4621_v18  ;;  %3655 = vst.msk [vmem:[%s5452_s25 + $0x1a4] sm:$0xf] %vm3549_vm2, %v4491_v19  ;;  %v4883_v21 = vpop.f32.mrb[108].mxu0 }
 0x1be   : > { %3783 = vst.msk [vmem:[%s5452_s25 + $0x3a4] sm:$0xf] %vm3549_vm2, %v4619_v20  ;;  %v1943_v22 = vadd.f32 %v5851_v48, %v4883_v21  ;;  %v5011_v23 = vpop.f32.mrb[108].mxu1  ;;  %v1934_v24 = vpop.f32.mrb[109].mxu0 }
 0x1bf   : > { %v2455_v25 = vadd.f32 %v5851_v48, %v5011_v23  ;;  %v1935_v26 = vadd.f32 %v5851_v48, %v1934_v24  ;;  %v2446_v27 = vpop.f32.mrb[109].mxu1  ;;  %v4884_v28 = vpop.f32.mrb[110].mxu0 }
 0x1c0   : > { %v4496_v29 = vpack.c.bf16 %v1943_v22, %v1943_v22  ;;  %v2447_v30 = vadd.f32 %v5851_v48, %v2446_v27  ;;  %v1946_v31 = vadd.f32 %v5851_v48, %v4884_v28  ;;  %v5012_v32 = vpop.f32.mrb[110].mxu1  ;;  %v1937_v33 = vpop.f32.mrb[111].mxu0 }
 0x1c1   : > { %v4624_v34 = vpack.c.bf16 %v2455_v25, %v2455_v25  ;;  %v4494_v35 = vpack.c.bf16 %v1935_v26, %v1935_v26  ;;  %v2458_v36 = vadd.f32 %v5851_v48, %v5012_v32  ;;  %v1938_v37 = vadd.f32 %v5851_v48, %v1937_v33  ;;  %v2449_v38 = vpop.f32.mrb[111].mxu1 }
 0x1c2   : > { %3660 = vst.msk [vmem:[%s5452_s25 + $0x1b8] sm:$0xf] %vm3549_vm2, %v4496_v29  ;;  %v4622_v39 = vpack.c.bf16 %v2447_v30, %v2447_v30  ;;  %v4497_v40 = vpack.c.bf16 %v1946_v31, %v1946_v31  ;;  %v2450_v41 = vadd.f32 %v5851_v48, %v2449_v38 }
 0x1c3   : > { %3788 = vst.msk [vmem:[%s5452_s25 + $0x3b8] sm:$0xf] %vm3549_vm2, %v4624_v34  ;;  %3658 = vst.msk [vmem:[%s5452_s25 + $0x1b0] sm:$0xf] %vm3549_vm2, %v4494_v35  ;;  %v4625_v42 = vpack.c.bf16 %v2458_v36, %v2458_v36  ;;  %v4495_v43 = vpack.c.bf16 %v1938_v37, %v1938_v37 }
 0x1c4   : > { %3786 = vst.msk [vmem:[%s5452_s25 + $0x3b0] sm:$0xf] %vm3549_vm2, %v4622_v39  ;;  %3661 = vst.msk [vmem:[%s5452_s25 + $0x1bc] sm:$0xf] %vm3549_vm2, %v4497_v40  ;;  %v4623_v44 = vpack.c.bf16 %v2450_v41, %v2450_v41 }
 0x1c5   : > { %3789 = vst.msk [vmem:[%s5452_s25 + $0x3bc] sm:$0xf] %vm3549_vm2, %v4625_v42  ;;  %3659 = vst.msk [vmem:[%s5452_s25 + $0x1b4] sm:$0xf] %vm3549_vm2, %v4495_v43  ;;  %v4887_v45 = vpop.f32.mrb[112].mxu0 }
 0x1c6   : > { %3787 = vst.msk [vmem:[%s5452_s25 + $0x3b4] sm:$0xf] %vm3549_vm2, %v4623_v44  ;;  %v1959_v46 = vadd.f32 %v5851_v48, %v4887_v45  ;;  %v5015_v47 = vpop.f32.mrb[112].mxu1  ;;  %v1950_v49 = vpop.f32.mrb[113].mxu0 }
 0x1c7   : > { %v2471_v50 = vadd.f32 %v5851_v48, %v5015_v47  ;;  %v1951_v51 = vadd.f32 %v5851_v48, %v1950_v49  ;;  %v2462_v52 = vpop.f32.mrb[113].mxu1  ;;  %v4888_v53 = vpop.f32.mrb[114].mxu0 }
 0x1c8   : > { %v4500_v54 = vpack.c.bf16 %v1959_v46, %v1959_v46  ;;  %v2463_v55 = vadd.f32 %v5851_v48, %v2462_v52  ;;  %v1962_v56 = vadd.f32 %v5851_v48, %v4888_v53  ;;  %v5016_v57 = vpop.f32.mrb[114].mxu1  ;;  %v1953_v58 = vpop.f32.mrb[115].mxu0 }
 0x1c9   : > { %v4628_v59 = vpack.c.bf16 %v2471_v50, %v2471_v50  ;;  %v4498_v60 = vpack.c.bf16 %v1951_v51, %v1951_v51  ;;  %v2474_v61 = vadd.f32 %v5851_v48, %v5016_v57  ;;  %v1954_v62 = vadd.f32 %v5851_v48, %v1953_v58  ;;  %v2465_v63 = vpop.f32.mrb[115].mxu1 }
 0x1ca   : > { %3664 = vst.msk [vmem:[%s5452_s25 + $0x1c8] sm:$0xf] %vm3549_vm2, %v4500_v54  ;;  %v4626_v0 = vpack.c.bf16 %v2463_v55, %v2463_v55  ;;  %v4501_v1 = vpack.c.bf16 %v1962_v56, %v1962_v56  ;;  %v2466_v2 = vadd.f32 %v5851_v48, %v2465_v63 }
 0x1cb   : > { %3792 = vst.msk [vmem:[%s5452_s25 + $0x3c8] sm:$0xf] %vm3549_vm2, %v4628_v59  ;;  %3662 = vst.msk [vmem:[%s5452_s25 + $0x1c0] sm:$0xf] %vm3549_vm2, %v4498_v60  ;;  %v4629_v3 = vpack.c.bf16 %v2474_v61, %v2474_v61  ;;  %v4499_v4 = vpack.c.bf16 %v1954_v62, %v1954_v62 }
 0x1cc   : > { %3790 = vst.msk [vmem:[%s5452_s25 + $0x3c0] sm:$0xf] %vm3549_vm2, %v4626_v0  ;;  %3665 = vst.msk [vmem:[%s5452_s25 + $0x1cc] sm:$0xf] %vm3549_vm2, %v4501_v1  ;;  %v4627_v5 = vpack.c.bf16 %v2466_v2, %v2466_v2 }
 0x1cd   : > { %3793 = vst.msk [vmem:[%s5452_s25 + $0x3cc] sm:$0xf] %vm3549_vm2, %v4629_v3  ;;  %3663 = vst.msk [vmem:[%s5452_s25 + $0x1c4] sm:$0xf] %vm3549_vm2, %v4499_v4  ;;  %v4891_v6 = vpop.f32.mrb[116].mxu0 }
 0x1ce   : > { %3791 = vst.msk [vmem:[%s5452_s25 + $0x3c4] sm:$0xf] %vm3549_vm2, %v4627_v5  ;;  %v1975_v7 = vadd.f32 %v5851_v48, %v4891_v6  ;;  %v5019_v8 = vpop.f32.mrb[116].mxu1  ;;  %v1966_v9 = vpop.f32.mrb[117].mxu0 }
 0x1cf   : > { %v2487_v10 = vadd.f32 %v5851_v48, %v5019_v8  ;;  %v1967_v11 = vadd.f32 %v5851_v48, %v1966_v9  ;;  %v2478_v12 = vpop.f32.mrb[117].mxu1  ;;  %v4892_v13 = vpop.f32.mrb[118].mxu0 }
 0x1d0   : > { %v4504_v14 = vpack.c.bf16 %v1975_v7, %v1975_v7  ;;  %v2479_v15 = vadd.f32 %v5851_v48, %v2478_v12  ;;  %v1978_v16 = vadd.f32 %v5851_v48, %v4892_v13  ;;  %v5020_v17 = vpop.f32.mrb[118].mxu1  ;;  %v1969_v18 = vpop.f32.mrb[119].mxu0 }
 0x1d1   : > { %v4632_v19 = vpack.c.bf16 %v2487_v10, %v2487_v10  ;;  %v4502_v20 = vpack.c.bf16 %v1967_v11, %v1967_v11  ;;  %v2490_v21 = vadd.f32 %v5851_v48, %v5020_v17  ;;  %v1970_v22 = vadd.f32 %v5851_v48, %v1969_v18  ;;  %v2481_v23 = vpop.f32.mrb[119].mxu1 }
 0x1d2   : > { %3668 = vst.msk [vmem:[%s5452_s25 + $0x1d8] sm:$0xf] %vm3549_vm2, %v4504_v14  ;;  %v4630_v24 = vpack.c.bf16 %v2479_v15, %v2479_v15  ;;  %v4505_v25 = vpack.c.bf16 %v1978_v16, %v1978_v16  ;;  %v2482_v26 = vadd.f32 %v5851_v48, %v2481_v23 }
 0x1d3   : > { %3796 = vst.msk [vmem:[%s5452_s25 + $0x3d8] sm:$0xf] %vm3549_vm2, %v4632_v19  ;;  %3666 = vst.msk [vmem:[%s5452_s25 + $0x1d0] sm:$0xf] %vm3549_vm2, %v4502_v20  ;;  %v4633_v27 = vpack.c.bf16 %v2490_v21, %v2490_v21  ;;  %v4503_v28 = vpack.c.bf16 %v1970_v22, %v1970_v22 }
 0x1d4   : > { %3794 = vst.msk [vmem:[%s5452_s25 + $0x3d0] sm:$0xf] %vm3549_vm2, %v4630_v24  ;;  %3669 = vst.msk [vmem:[%s5452_s25 + $0x1dc] sm:$0xf] %vm3549_vm2, %v4505_v25  ;;  %v4631_v29 = vpack.c.bf16 %v2482_v26, %v2482_v26 }
 0x1d5   : > { %3797 = vst.msk [vmem:[%s5452_s25 + $0x3dc] sm:$0xf] %vm3549_vm2, %v4633_v27  ;;  %3667 = vst.msk [vmem:[%s5452_s25 + $0x1d4] sm:$0xf] %vm3549_vm2, %v4503_v28  ;;  %v4895_v30 = vpop.f32.mrb[120].mxu0 }
 0x1d6   : > { %3795 = vst.msk [vmem:[%s5452_s25 + $0x3d4] sm:$0xf] %vm3549_vm2, %v4631_v29  ;;  %v1991_v31 = vadd.f32 %v5851_v48, %v4895_v30  ;;  %v5023_v32 = vpop.f32.mrb[120].mxu1  ;;  %v1982_v33 = vpop.f32.mrb[121].mxu0 }
 0x1d7   : > { %v2503_v34 = vadd.f32 %v5851_v48, %v5023_v32  ;;  %v1983_v35 = vadd.f32 %v5851_v48, %v1982_v33  ;;  %v2494_v36 = vpop.f32.mrb[121].mxu1  ;;  %v4896_v37 = vpop.f32.mrb[122].mxu0 }
 0x1d8   : > { %v4508_v38 = vpack.c.bf16 %v1991_v31, %v1991_v31  ;;  %v2495_v39 = vadd.f32 %v5851_v48, %v2494_v36  ;;  %v1994_v40 = vadd.f32 %v5851_v48, %v4896_v37  ;;  %v5024_v41 = vpop.f32.mrb[122].mxu1  ;;  %v1985_v42 = vpop.f32.mrb[123].mxu0 }
 0x1d9   : > { %v4636_v43 = vpack.c.bf16 %v2503_v34, %v2503_v34  ;;  %v4506_v44 = vpack.c.bf16 %v1983_v35, %v1983_v35  ;;  %v2506_v45 = vadd.f32 %v5851_v48, %v5024_v41  ;;  %v1986_v46 = vadd.f32 %v5851_v48, %v1985_v42  ;;  %v2497_v47 = vpop.f32.mrb[123].mxu1 }
 0x1da   : > { %3672 = vst.msk [vmem:[%s5452_s25 + $0x1e8] sm:$0xf] %vm3549_vm2, %v4508_v38  ;;  %v4634_v49 = vpack.c.bf16 %v2495_v39, %v2495_v39  ;;  %v4509_v50 = vpack.c.bf16 %v1994_v40, %v1994_v40  ;;  %v2498_v51 = vadd.f32 %v5851_v48, %v2497_v47  ;;  %v5170_v48 = vld [vmem:[%s6261_s2] ss:$0 sm:$0xff] }
 0x1db   : > { %3800 = vst.msk [vmem:[%s5452_s25 + $0x3e8] sm:$0xf] %vm3549_vm2, %v4636_v43  ;;  %3670 = vst.msk [vmem:[%s5452_s25 + $0x1e0] sm:$0xf] %vm3549_vm2, %v4506_v44  ;;  %v4637_v52 = vpack.c.bf16 %v2506_v45, %v2506_v45  ;;  %v4507_v53 = vpack.c.bf16 %v1986_v46, %v1986_v46 }
 0x1dc   : > { %3798 = vst.msk [vmem:[%s5452_s25 + $0x3e0] sm:$0xf] %vm3549_vm2, %v4634_v49  ;;  %3673 = vst.msk [vmem:[%s5452_s25 + $0x1ec] sm:$0xf] %vm3549_vm2, %v4509_v50  ;;  %v4635_v54 = vpack.c.bf16 %v2498_v51, %v2498_v51 }
 0x1dd   : > { %3801 = vst.msk [vmem:[%s5452_s25 + $0x3ec] sm:$0xf] %vm3549_vm2, %v4637_v52  ;;  %3671 = vst.msk [vmem:[%s5452_s25 + $0x1e4] sm:$0xf] %vm3549_vm2, %v4507_v53  ;;  %v4899_v55 = vpop.f32.mrb[124].mxu0 }
 0x1de   : > { %3799 = vst.msk [vmem:[%s5452_s25 + $0x3e4] sm:$0xf] %vm3549_vm2, %v4635_v54  ;;  %v2007_v56 = vadd.f32 %v5170_v48, %v4899_v55  ;;  %v5027_v57 = vpop.f32.mrb[124].mxu1  ;;  %v1998_v58 = vpop.f32.mrb[125].mxu0 }
 0x1df   : > { %v2519_v59 = vadd.f32 %v5170_v48, %v5027_v57  ;;  %v1999_v60 = vadd.f32 %v5170_v48, %v1998_v58  ;;  %v2510_v61 = vpop.f32.mrb[125].mxu1  ;;  %v4900_v62 = vpop.f32.mrb[126].mxu0 }
 0x1e0   : > { %v4512_v63 = vpack.c.bf16 %v2007_v56, %v2007_v56  ;;  %v2511_v0 = vadd.f32 %v5170_v48, %v2510_v61  ;;  %v2010_v1 = vadd.f32 %v5170_v48, %v4900_v62  ;;  %v5028_v2 = vpop.f32.mrb[126].mxu1  ;;  %v2001_v3 = vpop.f32.mrb[127].mxu0 }
 0x1e1   : > { %v4640_v4 = vpack.c.bf16 %v2519_v59, %v2519_v59  ;;  %v4510_v5 = vpack.c.bf16 %v1999_v60, %v1999_v60  ;;  %v2522_v6 = vadd.f32 %v5170_v48, %v5028_v2  ;;  %v2002_v7 = vadd.f32 %v5170_v48, %v2001_v3  ;;  %v2513_v8 = vpop.f32.mrb[127].mxu1 }
 0x1e2   : > { %3676 = vst.msk [vmem:[%s5452_s25 + $0x1f8] sm:$0xf] %vm3549_vm2, %v4512_v63  ;;  %v4638_v9 = vpack.c.bf16 %v2511_v0, %v2511_v0  ;;  %v4513_v10 = vpack.c.bf16 %v2010_v1, %v2010_v1  ;;  %v2514_v11 = vadd.f32 %v5170_v48, %v2513_v8 }
 0x1e3   : > { %3804 = vst.msk [vmem:[%s5452_s25 + $0x3f8] sm:$0xf] %vm3549_vm2, %v4640_v4  ;;  %3674 = vst.msk [vmem:[%s5452_s25 + $0x1f0] sm:$0xf] %vm3549_vm2, %v4510_v5  ;;  %v4641_v12 = vpack.c.bf16 %v2522_v6, %v2522_v6  ;;  %v4511_v13 = vpack.c.bf16 %v2002_v7, %v2002_v7 }
 0x1e4   : > { %3802 = vst.msk [vmem:[%s5452_s25 + $0x3f0] sm:$0xf] %vm3549_vm2, %v4638_v9  ;;  %3677 = vst.msk [vmem:[%s5452_s25 + $0x1fc] sm:$0xf] %vm3549_vm2, %v4513_v10  ;;  %v4639_v14 = vpack.c.bf16 %v2514_v11, %v2514_v11 }
 0x1e5   : > { %3805 = vst.msk [vmem:[%s5452_s25 + $0x3fc] sm:$0xf] %vm3549_vm2, %v4641_v12  ;;  %3675 = vst.msk [vmem:[%s5452_s25 + $0x1f4] sm:$0xf] %vm3549_vm2, %v4511_v13 }
 0x1e6   : > { %3803 = vst.msk [vmem:[%s5452_s25 + $0x3f4] sm:$0xf] %vm3549_vm2, %v4639_v14 }
 0x1e7 PF: > { %s13_s12 = sadd.s32 1, %s5177_s12  }
 0x1e8   : > { %p10_p4 = scmp.ge.s32.totalorder %s13_s12, 4  }
 0x1ea   :  { %12 = sbr.rel (!%p10_p4) target bundleno = 1 (0x1), region = 62 }

</bundles_post_ra>
